<compile_context>
chip_gen: v7x
topology: tpu7x:2x2x1
jax: 0.10.0
libtpu: 0.0.40
codegen_flags: <defaults>
</compile_context>

<pallas_src>
import functools

import jax
import jax.numpy as jnp
from jax import lax
from jax.experimental import pallas as pl
from jax.experimental.pallas import tpu as pltpu


def _round_up(x, m):
    return (x + m - 1) // m * m


def lstm_classifier_kernel(nact_ref, last_blk_ref,             # scalar prefetch (SMEM)
                           lm1_ref, x_ref, w_ih_ref, w_hh_ref, b_ref,
                           w_lin_ref, b_lin_ref, out_ref,
                           h_scr, c_scr, last_scr, xw_scr,
                           *, t_chunk, tb, h_pad, mm_dtype, unroll):
    bt = pl.program_id(0)
    ci = pl.program_id(1)

    @pl.when(ci == 0)
    def _init():
        h_scr[...] = jnp.zeros_like(h_scr)
        c_scr[...] = jnp.zeros_like(c_scr)
        last_scr[...] = jnp.zeros_like(last_scr)

    # Skip time chunks that are entirely padding for this batch tile.
    @pl.when(ci < nact_ref[bt])
    def _compute():
        # Whole-chunk input projection: one large MXU matmul; bias broadcast hoisted
        # out of the serial recurrence (once per chunk, not per timestep).
        xw_scr[...] = (jnp.dot(x_ref[...], w_ih_ref[...],
                               preferred_element_type=jnp.float32)
                       + b_ref[...])

        lm1 = lm1_ref[...]                 # (tb, 1) int32, loaded once per chunk
        t0 = ci * t_chunk
        H = h_pad

        def step(t, carry):
            h, c, last = carry
            row = pl.multiple_of(t * tb, tb)
            gates = (xw_scr[pl.ds(row, tb), :]
                     + jnp.dot(h.astype(mm_dtype), w_hh_ref[...],
                               preferred_element_type=jnp.float32))
            # PyTorch gate order i, f, g, o; each gate spans whole 128-lane groups.
            i_g = jax.nn.sigmoid(gates[:, 0:H])
            f_g = jax.nn.sigmoid(gates[:, H:2 * H])
            g_g = jnp.tanh(gates[:, 2 * H:3 * H])
            o_g = jax.nn.sigmoid(gates[:, 3 * H:4 * H])
            c = f_g * c + i_g * g_g
            h = o_g * jnp.tanh(c)
            # Capture hidden state at t == length-1 (pack_padded_sequence semantics).
            last = jnp.where(lm1 == (t0 + t), h, last)
            return h, c, last

        h, c, last = lax.fori_loop(
            0, t_chunk, step, (h_scr[...], c_scr[...], last_scr[...]),
            unroll=unroll)

        h_scr[...] = h
        c_scr[...] = c
        last_scr[...] = last

    @pl.when(ci == pl.num_programs(1) - 1)
    def _finalize():
        logits = (jnp.dot(last_scr[...].astype(mm_dtype), w_lin_ref[...],
                          preferred_element_type=jnp.float32)
                  + b_lin_ref[...])
        out_ref[...] = logits.astype(out_ref.dtype)


def _pad_gate_cols(w, h, h_pad):
    """Pad a (*, 4*h) gate-stacked matrix to (*, 4*h_pad), keeping i|f|g|o blocks aligned."""
    in_dim = w.shape[0]
    w4 = w.reshape(in_dim, 4, h)
    w4 = jnp.pad(w4, ((0, 0), (0, 0), (0, h_pad - h)))
    return w4.reshape(in_dim, 4 * h_pad)


@functools.partial(jax.jit,
                   static_argnames=("t_chunk", "batch_tile", "matmul_dtype"))
def sentence_classifier_forward(captions, lengths, params, *,
                                t_chunk=None, batch_tile=32,
                                matmul_dtype=jnp.bfloat16):
    """captions: (B, T) int32, lengths: (B,) int32 (each >= 1, like PyTorch)."""
    embed_tbl = params["embed"]          # (V, E), row 0 zeroed (padding_idx=0)
    w_ih = params["w_ih"]                # (E, 4H)
    w_hh = params["w_hh"]                # (H, 4H)
    b = params["b"]                      # (1, 4H)
    w_lin = params["w_lin"]              # (H, C)
    b_lin = params["b_lin"]              # (1, C)

    B, T = captions.shape
    E = embed_tbl.shape[1]
    H = w_hh.shape[0]
    C = w_lin.shape[1]

    # Hardware-friendly padded sizes.
    # NOTE: at production batch sizes pick batch_tile so num_bt >= 2 (v7x has 2 TensorCores
    # and only the "parallel" batch axis is split across them).
    TB = max(8, min(_round_up(batch_tile, 8), _round_up(B, 8)))
    B_pad = _round_up(max(B, TB), TB)
    E_pad = _round_up(E, 128)
    H_pad = _round_up(H, 128)            # lane-aligned gate slices
    C_pad = _round_up(C, 128)            # lane-dense output store
    if t_chunk is None:
        # Keep the per-chunk input-projection matmul around ~1024 rows.
        t_chunk = max(8, min(_round_up(T, 8), 1024 // TB))
    T_pad = _round_up(T, t_chunk)
    num_bt = B_pad // TB
    num_chunks = T_pad // t_chunk
    unroll = min(8, t_chunk)             # partial unroll of the serial recurrence

    # Pad params (zero padding keeps padded hidden units exactly zero — see invariant above).
    w_ih_p = jnp.pad(_pad_gate_cols(w_ih, H, H_pad),
                     ((0, E_pad - E), (0, 0))).astype(matmul_dtype)
    w_hh_p = jnp.pad(_pad_gate_cols(w_hh, H, H_pad),
                     ((0, H_pad - H), (0, 0))).astype(matmul_dtype)
    b_p = jnp.pad(b.reshape(4, H), ((0, 0), (0, H_pad - H))).reshape(1, 4 * H_pad)
    b_p = b_p.astype(jnp.float32)
    w_lin_p = jnp.pad(w_lin, ((0, H_pad - H), (0, C_pad - C))).astype(matmul_dtype)
    b_lin_p = jnp.pad(b_lin, ((0, 0), (0, C_pad - C))).astype(jnp.float32)

    # Glue: embedding lookup (gather) + eval-mode dropout (identity) + padding.
    # Cast before the gather so the (B,T,E) materialization/transpose moves half the bytes.
    emb = jnp.take(embed_tbl.astype(matmul_dtype), captions, axis=0)   # (B, T, E)
    emb = jnp.pad(emb, ((0, B_pad - B), (0, T_pad - T), (0, E_pad - E)))
    # Arrange as (batch_tiles, T_pad*TB, E_pad): time-major, flattened within each batch tile.
    x = emb.reshape(num_bt, TB, T_pad, E_pad).transpose(0, 2, 1, 3)
    x = x.reshape(num_bt, T_pad * TB, E_pad)

    lengths_i = lengths.astype(jnp.int32)
    lm1 = jnp.pad(lengths_i - 1, (0, B_pad - B), constant_values=-1).reshape(B_pad, 1)

    # Scalar-prefetch tables: active time-chunks per batch tile (padded rows have length 0).
    len_pad = jnp.pad(lengths_i, (0, B_pad - B))
    maxlen_tile = len_pad.reshape(num_bt, TB).max(axis=1)              # (num_bt,)
    nact = (maxlen_tile + t_chunk - 1) // t_chunk                      # chunks with real data
    last_blk = jnp.maximum(nact - 1, 0)                                # clamp for all-pad tiles

    # Explicit VMEM budget only when the conservative scoped default (16 MiB, v5e) is exceeded.
    mm_bytes = jnp.dtype(matmul_dtype).itemsize
    vmem_est = (
        2 * (E_pad * 4 * H_pad + H_pad * 4 * H_pad + H_pad * C_pad) * mm_bytes  # weights (x2 buf)
        + 2 * (4 * H_pad + C_pad) * 4                                           # biases (f32)
        + 2 * t_chunk * TB * E_pad * mm_bytes                                   # x chunk (x2 buf)
        + 2 * TB * 4                                                            # lm1
        + 2 * TB * C_pad * 4                                                    # output block
        + (3 * TB * H_pad + t_chunk * TB * 4 * H_pad) * 4                       # scratch
    )
    vmem_limit = None if vmem_est <= (16 << 20) else min(int(vmem_est * 5 // 4), 64 << 20)

    def x_index_map(bt, ci, nact_ref, last_blk_ref):
        # Skipped (all-padding) chunks re-use the last active chunk's block index,
        # so their DMA is elided by the pipeline.
        return (bt, jnp.minimum(ci, last_blk_ref[bt]), 0)

    def tile_map(bt, ci, nact_ref, last_blk_ref):
        return (bt, 0)

    def const_map(bt, ci, nact_ref, last_blk_ref):
        return (0, 0)

    kernel = functools.partial(lstm_classifier_kernel,
                               t_chunk=t_chunk, tb=TB, h_pad=H_pad,
                               mm_dtype=matmul_dtype, unroll=unroll)

    out = pl.pallas_call(
        kernel,
        out_shape=jax.ShapeDtypeStruct((B_pad, C_pad), jnp.float32),
        grid_spec=pltpu.PrefetchScalarGridSpec(
            num_scalar_prefetch=2,
            grid=(num_bt, num_chunks),
            in_specs=[
                pl.BlockSpec((TB, 1), tile_map),                                  # lengths-1
                pl.BlockSpec((pl.Squeezed(), t_chunk * TB, E_pad), x_index_map),  # x chunk
                pl.BlockSpec((E_pad, 4 * H_pad), const_map),                      # W_ih^T
                pl.BlockSpec((H_pad, 4 * H_pad), const_map),                      # W_hh^T
                pl.BlockSpec((1, 4 * H_pad), const_map),                          # b_ih + b_hh
                pl.BlockSpec((H_pad, C_pad), const_map),                          # W_lin^T
                pl.BlockSpec((1, C_pad), const_map),                              # b_lin
            ],
            out_specs=pl.BlockSpec((TB, C_pad), tile_map),                        # time-resident
            scratch_shapes=[
                pltpu.VMEM((TB, H_pad), jnp.float32),                 # h
                pltpu.VMEM((TB, H_pad), jnp.float32),                 # c
                pltpu.VMEM((TB, H_pad), jnp.float32),                 # last hidden
                pltpu.VMEM((t_chunk * TB, 4 * H_pad), jnp.float32),   # x @ W_ih for the chunk
            ],
        ),
        compiler_params=pltpu.CompilerParams(
            dimension_semantics=("parallel", "arbitrary"),
            vmem_limit_bytes=vmem_limit),
    )(nact, last_blk, lm1, x, w_ih_p, w_hh_p, b_p, w_lin_p, b_lin_p)

    return out[:B, :C]


def init_params(key, vocab_size, word_embed_size, hidden_size, num_classes):
    k = jax.random.split(key, 6)
    E, H, V, C = word_embed_size, hidden_size, vocab_size, num_classes

    embed = jax.random.uniform(k[0], (V, E), jnp.float32, -0.1, 0.1)
    embed = embed.at[0].set(0.0)  # padding_idx=0

    s = 1.0 / jnp.sqrt(jnp.float32(H))   # PyTorch LSTM default init
    w_ih = jax.random.uniform(k[1], (4 * H, E), jnp.float32, -s, s)
    w_hh = jax.random.uniform(k[2], (4 * H, H), jnp.float32, -s, s)
    b_ih = jax.random.uniform(k[3], (4 * H,), jnp.float32, -s, s)
    b_hh = jax.random.uniform(k[4], (4 * H,), jnp.float32, -s, s)

    w_lin = jax.random.uniform(k[5], (C, H), jnp.float32, -0.1, 0.1)
    b_lin = jnp.zeros((C,), jnp.float32)

    return {
        "embed": embed,
        "w_ih": w_ih.T,                          # (E, 4H)
        "w_hh": w_hh.T,                          # (H, 4H)
        "b": (b_ih + b_hh).reshape(1, 4 * H),    # (1, 4H)
        "w_lin": w_lin.T,                        # (H, C)
        "b_lin": b_lin.reshape(1, C),            # (1, C)
    }


def reference_forward(captions, lengths, params):
    """Pure-JAX f32 reference of the same math (for a sanity check)."""
    emb = jnp.take(params["embed"], captions, axis=0)          # (B, T, E)
    B, T, E = emb.shape
    H = params["w_hh"].shape[0]

    def step(carry, x_t):
        h, c = carry
        gates = x_t @ params["w_ih"] + h @ params["w_hh"] + params["b"]
        i = jax.nn.sigmoid(gates[:, 0:H])
        f = jax.nn.sigmoid(gates[:, H:2 * H])
        g = jnp.tanh(gates[:, 2 * H:3 * H])
        o = jax.nn.sigmoid(gates[:, 3 * H:4 * H])
        c = f * c + i * g
        h = o * jnp.tanh(c)
        return (h, c), h

    (_, _), hs = jax.lax.scan(step, (jnp.zeros((B, H)), jnp.zeros((B, H))),
                              jnp.transpose(emb, (1, 0, 2)))
    hs = jnp.transpose(hs, (1, 0, 2))                          # (B, T, H)
    last = hs[jnp.arange(B), lengths - 1]                      # (B, H)
    return last @ params["w_lin"] + params["b_lin"]


if __name__ == "__main__":
    # Small shapes consistent with the module's forward.
    B, T = 2, 8
    vocab_size, word_embed_size, hidden_size, num_classes = 50, 16, 32, 8

    key = jax.random.PRNGKey(0)
    pkey, ckey = jax.random.split(key)
    params = init_params(pkey, vocab_size, word_embed_size, hidden_size, num_classes)

    # lengths sorted descending (pack_padded_sequence requirement, each >= 1); pad ids are 0.
    lengths = jnp.array([8, 5], dtype=jnp.int32)
    captions = jax.random.randint(ckey, (B, T), 1, vocab_size, dtype=jnp.int32)
    mask = jnp.arange(T)[None, :] < lengths[:, None]
    captions = jnp.where(mask, captions, 0)

    ref = reference_forward(captions, lengths, params)

    # Default (bf16 MXU operands) path — relaxed tolerance vs f32 reference.
    out_bf16 = sentence_classifier_forward(captions, lengths, params)
    out_bf16 = jax.block_until_ready(out_bf16)
    assert out_bf16.shape == (B, num_classes)
    assert jnp.allclose(out_bf16, ref, atol=5e-2, rtol=5e-2)

    # f32 path — tight check that the kernel math matches the reference exactly.
    out_f32 = sentence_classifier_forward(captions, lengths, params,
                                          matmul_dtype=jnp.float32)
    out_f32 = jax.block_until_ready(out_f32)
    assert jnp.allclose(out_f32, ref, atol=1e-4, rtol=1e-4)

    print("KERNEL_OK")
</pallas_src>

<mosaic_0001>
module attributes {stable_mosaic.version = 11 : i64} {
  func.func @lstm_classifier_kernel(%arg0: i32, %arg1: i32, %arg2: memref<1xi32, #tpu.memory_space<smem>>, %arg3: memref<1xi32, #tpu.memory_space<smem>>, %arg4: memref<8x1xi32, #tpu.memory_space<vmem>>, %arg5: memref<1x64x128xbf16, #tpu.memory_space<vmem>>, %arg6: memref<128x512xbf16, #tpu.memory_space<vmem>>, %arg7: memref<128x512xbf16, #tpu.memory_space<vmem>>, %arg8: memref<1x512xf32, #tpu.memory_space<vmem>>, %arg9: memref<128x128xbf16, #tpu.memory_space<vmem>>, %arg10: memref<1x128xf32, #tpu.memory_space<vmem>>, %arg11: memref<8x128xf32, #tpu.memory_space<vmem>>, %arg12: memref<8x128xf32, #tpu.memory_space<vmem>>, %arg13: memref<8x128xf32, #tpu.memory_space<vmem>>, %arg14: memref<8x128xf32, #tpu.memory_space<vmem>>, %arg15: memref<64x512xf32, #tpu.memory_space<vmem>>) attributes {dimension_semantics = [#tpu.dimension_semantics<parallel>, #tpu.dimension_semantics<arbitrary>], iteration_bounds = array<i64: 1, 1>, scalar_prefetch = 2 : i64, scratch_operands = 4 : i64, tpu.core_type = #tpu.core_type<tc>, window_params = [{transform_indices = @transform_0, window_bounds = array<i64: 8, 1>}, {transform_indices = @transform_1, window_bounds = array<i64: 1, 64, 128>}, {pipeline_mode = #tpu.pipeline_mode<synchronous>, transform_indices = @transform_2, window_bounds = array<i64: 128, 512>}, {pipeline_mode = #tpu.pipeline_mode<synchronous>, transform_indices = @transform_3, window_bounds = array<i64: 128, 512>}, {pipeline_mode = #tpu.pipeline_mode<synchronous>, transform_indices = @transform_4, window_bounds = array<i64: 1, 512>}, {pipeline_mode = #tpu.pipeline_mode<synchronous>, transform_indices = @transform_5, window_bounds = array<i64: 128, 128>}, {pipeline_mode = #tpu.pipeline_mode<synchronous>, transform_indices = @transform_6, window_bounds = array<i64: 1, 128>}, {transform_indices = @transform_7, window_bounds = array<i64: 8, 128>}]} {
    %c0_i32 = arith.constant 0 : i32
    %0 = arith.cmpi eq, %arg1, %c0_i32 : i32
    %1 = arith.extui %0 : i1 to i32
    %c0_i32_0 = arith.constant 0 : i32
    %2 = arith.cmpi ne, %1, %c0_i32_0 : i32
    scf.if %2 {
      %cst = arith.constant 0.000000e+00 : f32
      %11 = vector.broadcast %cst : f32 to vector<8x128xf32>
      %c0 = arith.constant 0 : index
      %c0_4 = arith.constant 0 : index
      %12 = vector.load %arg12[%c0, %c0_4] : memref<8x128xf32, #tpu.memory_space<vmem>>, vector<8x128xf32>
      tpu.vector_store %arg12[%c0, %c0_4], %11 {strides = array<i32>} : memref<8x128xf32, #tpu.memory_space<vmem>>, vector<8x128xf32>,
      %cst_5 = arith.constant 0.000000e+00 : f32
      %13 = vector.broadcast %cst_5 : f32 to vector<8x128xf32>
      %c0_6 = arith.constant 0 : index
      %c0_7 = arith.constant 0 : index
      %14 = vector.load %arg13[%c0_6, %c0_7] : memref<8x128xf32, #tpu.memory_space<vmem>>, vector<8x128xf32>
      tpu.vector_store %arg13[%c0_6, %c0_7], %13 {strides = array<i32>} : memref<8x128xf32, #tpu.memory_space<vmem>>, vector<8x128xf32>,
      %cst_8 = arith.constant 0.000000e+00 : f32
      %15 = vector.broadcast %cst_8 : f32 to vector<8x128xf32>
      %c0_9 = arith.constant 0 : index
      %c0_10 = arith.constant 0 : index
      %16 = vector.load %arg14[%c0_9, %c0_10] : memref<8x128xf32, #tpu.memory_space<vmem>>, vector<8x128xf32>
      tpu.vector_store %arg14[%c0_9, %c0_10], %15 {strides = array<i32>} : memref<8x128xf32, #tpu.memory_space<vmem>>, vector<8x128xf32>,
    } else {
    }
    %3 = arith.index_cast %arg0 : i32 to index
    %4 = memref.load %arg2[%3] : memref<1xi32, #tpu.memory_space<smem>>
    %5 = arith.cmpi slt, %arg1, %4 : i32
    %6 = arith.extui %5 : i1 to i32
    %c0_i32_1 = arith.constant 0 : i32
    %7 = arith.cmpi ne, %6, %c0_i32_1 : i32
    scf.if %7 {
      %c0 = arith.constant 0 : index
      %c0_4 = arith.constant 0 : index
      %c0_5 = arith.constant 0 : index
      %11 = vector.load %arg5[%c0, %c0_4, %c0_5] : memref<1x64x128xbf16, #tpu.memory_space<vmem>>, vector<1x64x128xbf16>
      %12 = vector.shape_cast %11 : vector<1x64x128xbf16> to vector<64x128xbf16>
      %c0_6 = arith.constant 0 : index
      %c0_7 = arith.constant 0 : index
      %13 = vector.load %arg6[%c0_6, %c0_7] : memref<128x512xbf16, #tpu.memory_space<vmem>>, vector<128x512xbf16>
      %cst = arith.constant dense<0.000000e+00> : vector<64x512xf32>
      %14 = tpu.matmul %12, %13, %cst {dimension_numbers = #tpu.dot_dimension_numbers<[1], [0], [0], [1], [0, 0, 1, 1], [], []>} : vector<64x128xbf16>, vector<128x512xbf16>, vector<64x512xf32> -> vector<64x512xf32>
      %c0_8 = arith.constant 0 : index
      %c0_9 = arith.constant 0 : index
      %15 = vector.load %arg8[%c0_8, %c0_9] : memref<1x512xf32, #tpu.memory_space<vmem>>, vector<1x512xf32>
      %16 = vector.broadcast %15 : vector<1x512xf32> to vector<64x512xf32>
      %17 = arith.addf %14, %16 : vector<64x512xf32>
      %c0_10 = arith.constant 0 : index
      %c0_11 = arith.constant 0 : index
      %18 = vector.load %arg15[%c0_10, %c0_11] : memref<64x512xf32, #tpu.memory_space<vmem>>, vector<64x512xf32>
      tpu.vector_store %arg15[%c0_10, %c0_11], %17 {strides = array<i32>} : memref<64x512xf32, #tpu.memory_space<vmem>>, vector<64x512xf32>,
      %c0_12 = arith.constant 0 : index
      %c0_13 = arith.constant 0 : index
      %19 = vector.load %arg4[%c0_12, %c0_13] : memref<8x1xi32, #tpu.memory_space<vmem>>, vector<8x1xi32>
      %c8_i32 = arith.constant 8 : i32
      %20 = arith.muli %arg1, %c8_i32 : i32
      %c0_14 = arith.constant 0 : index
      %c0_15 = arith.constant 0 : index
      %21 = vector.load %arg12[%c0_14, %c0_15] : memref<8x128xf32, #tpu.memory_space<vmem>>, vector<8x128xf32>
      %c0_16 = arith.constant 0 : index
      %c0_17 = arith.constant 0 : index
      %22 = vector.load %arg13[%c0_16, %c0_17] : memref<8x128xf32, #tpu.memory_space<vmem>>, vector<8x128xf32>
      %c0_18 = arith.constant 0 : index
      %c0_19 = arith.constant 0 : index
      %23 = vector.load %arg14[%c0_18, %c0_19] : memref<8x128xf32, #tpu.memory_space<vmem>>, vector<8x128xf32>
      %c0_i32_20 = arith.constant 0 : i32
      %c8_i32_21 = arith.constant 8 : i32
      %24 = arith.muli %c0_i32_20, %c8_i32_21 : i32
      %25 = tpu.assume_multiple %24, 8 : i32
      %26 = arith.index_cast %25 : i32 to index
      %c0_22 = arith.constant 0 : index
      %27 = vector.load %arg15[%26, %c0_22] : memref<64x512xf32, #tpu.memory_space<vmem>>, vector<8x512xf32>
      %28 = arith.truncf %21 : vector<8x128xf32> to vector<8x128xbf16>
      %c0_23 = arith.constant 0 : index
      %c0_24 = arith.constant 0 : index
      %29 = vector.load %arg7[%c0_23, %c0_24] : memref<128x512xbf16, #tpu.memory_space<vmem>>, vector<128x512xbf16>
      %cst_25 = arith.constant dense<0.000000e+00> : vector<8x512xf32>
      %30 = tpu.matmul %28, %29, %cst_25 {dimension_numbers = #tpu.dot_dimension_numbers<[1], [0], [0], [1], [0, 0, 1, 1], [], []>} : vector<8x128xbf16>, vector<128x512xbf16>, vector<8x512xf32> -> vector<8x512xf32>
      %31 = arith.addf %27, %30 : vector<8x512xf32>
      %32 = vector.extract_strided_slice %31 {offsets = [0, 0], sizes = [8, 128], strides = [1, 1]} : vector<8x512xf32> to vector<8x128xf32>
      %33 = arith.negf %32 : vector<8x128xf32>
      %34 = math.exp %33 : vector<8x128xf32>
      %cst_26 = arith.constant 1.000000e+00 : f32
      %35 = vector.broadcast %cst_26 : f32 to vector<8x128xf32>
      %36 = arith.addf %35, %34 : vector<8x128xf32>
      %37 = arith.divf %35, %36 : vector<8x128xf32>
      %38 = vector.extract_strided_slice %31 {offsets = [0, 128], sizes = [8, 128], strides = [1, 1]} : vector<8x512xf32> to vector<8x128xf32>
      %39 = arith.negf %38 : vector<8x128xf32>
      %40 = math.exp %39 : vector<8x128xf32>
      %cst_27 = arith.constant 1.000000e+00 : f32
      %41 = vector.broadcast %cst_27 : f32 to vector<8x128xf32>
      %42 = arith.addf %41, %40 : vector<8x128xf32>
      %43 = arith.divf %41, %42 : vector<8x128xf32>
      %44 = vector.extract_strided_slice %31 {offsets = [0, 256], sizes = [8, 128], strides = [1, 1]} : vector<8x512xf32> to vector<8x128xf32>
      %45 = math.tanh %44 : vector<8x128xf32>
      %46 = vector.extract_strided_slice %31 {offsets = [0, 384], sizes = [8, 128], strides = [1, 1]} : vector<8x512xf32> to vector<8x128xf32>
      %47 = arith.negf %46 : vector<8x128xf32>
      %48 = math.exp %47 : vector<8x128xf32>
      %cst_28 = arith.constant 1.000000e+00 : f32
      %49 = vector.broadcast %cst_28 : f32 to vector<8x128xf32>
      %50 = arith.addf %49, %48 : vector<8x128xf32>
      %51 = arith.divf %49, %50 : vector<8x128xf32>
      %52 = arith.mulf %43, %22 : vector<8x128xf32>
      %53 = arith.mulf %37, %45 : vector<8x128xf32>
      %54 = arith.addf %52, %53 : vector<8x128xf32>
      %55 = math.tanh %54 : vector<8x128xf32>
      %56 = arith.mulf %51, %55 : vector<8x128xf32>
      %57 = arith.addi %20, %c0_i32_20 : i32
      %58 = vector.broadcast %57 : i32 to vector<8x1xi32>
      %59 = arith.cmpi eq, %19, %58 : vector<8x1xi32>
      %60 = vector.shape_cast %59 : vector<8x1xi1> to vector<8x1xi1>
      %61 = vector.broadcast %60 : vector<8x1xi1> to vector<8x128xi1>
      %62 = arith.select %61, %56, %23 : vector<8x128xi1>, vector<8x128xf32>
      %c1_i32 = arith.constant 1 : i32
      %c8_i32_29 = arith.constant 8 : i32
      %63 = arith.muli %c1_i32, %c8_i32_29 : i32
      %64 = tpu.assume_multiple %63, 8 : i32
      %65 = arith.index_cast %64 : i32 to index
      %c0_30 = arith.constant 0 : index
      %66 = vector.load %arg15[%65, %c0_30] : memref<64x512xf32, #tpu.memory_space<vmem>>, vector<8x512xf32>
      %67 = arith.truncf %56 : vector<8x128xf32> to vector<8x128xbf16>
      %c0_31 = arith.constant 0 : index
      %c0_32 = arith.constant 0 : index
      %68 = vector.load %arg7[%c0_31, %c0_32] : memref<128x512xbf16, #tpu.memory_space<vmem>>, vector<128x512xbf16>
      %cst_33 = arith.constant dense<0.000000e+00> : vector<8x512xf32>
      %69 = tpu.matmul %67, %68, %cst_33 {dimension_numbers = #tpu.dot_dimension_numbers<[1], [0], [0], [1], [0, 0, 1, 1], [], []>} : vector<8x128xbf16>, vector<128x512xbf16>, vector<8x512xf32> -> vector<8x512xf32>
      %70 = arith.addf %66, %69 : vector<8x512xf32>
      %71 = vector.extract_strided_slice %70 {offsets = [0, 0], sizes = [8, 128], strides = [1, 1]} : vector<8x512xf32> to vector<8x128xf32>
      %72 = arith.negf %71 : vector<8x128xf32>
      %73 = math.exp %72 : vector<8x128xf32>
      %cst_34 = arith.constant 1.000000e+00 : f32
      %74 = vector.broadcast %cst_34 : f32 to vector<8x128xf32>
      %75 = arith.addf %74, %73 : vector<8x128xf32>
      %76 = arith.divf %74, %75 : vector<8x128xf32>
      %77 = vector.extract_strided_slice %70 {offsets = [0, 128], sizes = [8, 128], strides = [1, 1]} : vector<8x512xf32> to vector<8x128xf32>
      %78 = arith.negf %77 : vector<8x128xf32>
      %79 = math.exp %78 : vector<8x128xf32>
      %cst_35 = arith.constant 1.000000e+00 : f32
      %80 = vector.broadcast %cst_35 : f32 to vector<8x128xf32>
      %81 = arith.addf %80, %79 : vector<8x128xf32>
      %82 = arith.divf %80, %81 : vector<8x128xf32>
      %83 = vector.extract_strided_slice %70 {offsets = [0, 256], sizes = [8, 128], strides = [1, 1]} : vector<8x512xf32> to vector<8x128xf32>
      %84 = math.tanh %83 : vector<8x128xf32>
      %85 = vector.extract_strided_slice %70 {offsets = [0, 384], sizes = [8, 128], strides = [1, 1]} : vector<8x512xf32> to vector<8x128xf32>
      %86 = arith.negf %85 : vector<8x128xf32>
      %87 = math.exp %86 : vector<8x128xf32>
      %cst_36 = arith.constant 1.000000e+00 : f32
      %88 = vector.broadcast %cst_36 : f32 to vector<8x128xf32>
      %89 = arith.addf %88, %87 : vector<8x128xf32>
      %90 = arith.divf %88, %89 : vector<8x128xf32>
      %91 = arith.mulf %82, %54 : vector<8x128xf32>
      %92 = arith.mulf %76, %84 : vector<8x128xf32>
      %93 = arith.addf %91, %92 : vector<8x128xf32>
      %94 = math.tanh %93 : vector<8x128xf32>
      %95 = arith.mulf %90, %94 : vector<8x128xf32>
      %96 = arith.addi %20, %c1_i32 : i32
      %97 = vector.broadcast %96 : i32 to vector<8x1xi32>
      %98 = arith.cmpi eq, %19, %97 : vector<8x1xi32>
      %99 = vector.shape_cast %98 : vector<8x1xi1> to vector<8x1xi1>
      %100 = vector.broadcast %99 : vector<8x1xi1> to vector<8x128xi1>
      %101 = arith.select %100, %95, %62 : vector<8x128xi1>, vector<8x128xf32>
      %c2_i32 = arith.constant 2 : i32
      %c8_i32_37 = arith.constant 8 : i32
      %102 = arith.muli %c2_i32, %c8_i32_37 : i32
      %103 = tpu.assume_multiple %102, 8 : i32
      %104 = arith.index_cast %103 : i32 to index
      %c0_38 = arith.constant 0 : index
      %105 = vector.load %arg15[%104, %c0_38] : memref<64x512xf32, #tpu.memory_space<vmem>>, vector<8x512xf32>
      %106 = arith.truncf %95 : vector<8x128xf32> to vector<8x128xbf16>
      %c0_39 = arith.constant 0 : index
      %c0_40 = arith.constant 0 : index
      %107 = vector.load %arg7[%c0_39, %c0_40] : memref<128x512xbf16, #tpu.memory_space<vmem>>, vector<128x512xbf16>
      %cst_41 = arith.constant dense<0.000000e+00> : vector<8x512xf32>
      %108 = tpu.matmul %106, %107, %cst_41 {dimension_numbers = #tpu.dot_dimension_numbers<[1], [0], [0], [1], [0, 0, 1, 1], [], []>} : vector<8x128xbf16>, vector<128x512xbf16>, vector<8x512xf32> -> vector<8x512xf32>
      %109 = arith.addf %105, %108 : vector<8x512xf32>
      %110 = vector.extract_strided_slice %109 {offsets = [0, 0], sizes = [8, 128], strides = [1, 1]} : vector<8x512xf32> to vector<8x128xf32>
      %111 = arith.negf %110 : vector<8x128xf32>
      %112 = math.exp %111 : vector<8x128xf32>
      %cst_42 = arith.constant 1.000000e+00 : f32
      %113 = vector.broadcast %cst_42 : f32 to vector<8x128xf32>
      %114 = arith.addf %113, %112 : vector<8x128xf32>
      %115 = arith.divf %113, %114 : vector<8x128xf32>
      %116 = vector.extract_strided_slice %109 {offsets = [0, 128], sizes = [8, 128], strides = [1, 1]} : vector<8x512xf32> to vector<8x128xf32>
      %117 = arith.negf %116 : vector<8x128xf32>
      %118 = math.exp %117 : vector<8x128xf32>
      %cst_43 = arith.constant 1.000000e+00 : f32
      %119 = vector.broadcast %cst_43 : f32 to vector<8x128xf32>
      %120 = arith.addf %119, %118 : vector<8x128xf32>
      %121 = arith.divf %119, %120 : vector<8x128xf32>
      %122 = vector.extract_strided_slice %109 {offsets = [0, 256], sizes = [8, 128], strides = [1, 1]} : vector<8x512xf32> to vector<8x128xf32>
      %123 = math.tanh %122 : vector<8x128xf32>
      %124 = vector.extract_strided_slice %109 {offsets = [0, 384], sizes = [8, 128], strides = [1, 1]} : vector<8x512xf32> to vector<8x128xf32>
      %125 = arith.negf %124 : vector<8x128xf32>
      %126 = math.exp %125 : vector<8x128xf32>
      %cst_44 = arith.constant 1.000000e+00 : f32
      %127 = vector.broadcast %cst_44 : f32 to vector<8x128xf32>
      %128 = arith.addf %127, %126 : vector<8x128xf32>
      %129 = arith.divf %127, %128 : vector<8x128xf32>
      %130 = arith.mulf %121, %93 : vector<8x128xf32>
      %131 = arith.mulf %115, %123 : vector<8x128xf32>
      %132 = arith.addf %130, %131 : vector<8x128xf32>
      %133 = math.tanh %132 : vector<8x128xf32>
      %134 = arith.mulf %129, %133 : vector<8x128xf32>
      %135 = arith.addi %20, %c2_i32 : i32
      %136 = vector.broadcast %135 : i32 to vector<8x1xi32>
      %137 = arith.cmpi eq, %19, %136 : vector<8x1xi32>
      %138 = vector.shape_cast %137 : vector<8x1xi1> to vector<8x1xi1>
      %139 = vector.broadcast %138 : vector<8x1xi1> to vector<8x128xi1>
      %140 = arith.select %139, %134, %101 : vector<8x128xi1>, vector<8x128xf32>
      %c3_i32 = arith.constant 3 : i32
      %c8_i32_45 = arith.constant 8 : i32
      %141 = arith.muli %c3_i32, %c8_i32_45 : i32
      %142 = tpu.assume_multiple %141, 8 : i32
      %143 = arith.index_cast %142 : i32 to index
      %c0_46 = arith.constant 0 : index
      %144 = vector.load %arg15[%143, %c0_46] : memref<64x512xf32, #tpu.memory_space<vmem>>, vector<8x512xf32>
      %145 = arith.truncf %134 : vector<8x128xf32> to vector<8x128xbf16>
      %c0_47 = arith.constant 0 : index
      %c0_48 = arith.constant 0 : index
      %146 = vector.load %arg7[%c0_47, %c0_48] : memref<128x512xbf16, #tpu.memory_space<vmem>>, vector<128x512xbf16>
      %cst_49 = arith.constant dense<0.000000e+00> : vector<8x512xf32>
      %147 = tpu.matmul %145, %146, %cst_49 {dimension_numbers = #tpu.dot_dimension_numbers<[1], [0], [0], [1], [0, 0, 1, 1], [], []>} : vector<8x128xbf16>, vector<128x512xbf16>, vector<8x512xf32> -> vector<8x512xf32>
      %148 = arith.addf %144, %147 : vector<8x512xf32>
      %149 = vector.extract_strided_slice %148 {offsets = [0, 0], sizes = [8, 128], strides = [1, 1]} : vector<8x512xf32> to vector<8x128xf32>
      %150 = arith.negf %149 : vector<8x128xf32>
      %151 = math.exp %150 : vector<8x128xf32>
      %cst_50 = arith.constant 1.000000e+00 : f32
      %152 = vector.broadcast %cst_50 : f32 to vector<8x128xf32>
      %153 = arith.addf %152, %151 : vector<8x128xf32>
      %154 = arith.divf %152, %153 : vector<8x128xf32>
      %155 = vector.extract_strided_slice %148 {offsets = [0, 128], sizes = [8, 128], strides = [1, 1]} : vector<8x512xf32> to vector<8x128xf32>
      %156 = arith.negf %155 : vector<8x128xf32>
      %157 = math.exp %156 : vector<8x128xf32>
      %cst_51 = arith.constant 1.000000e+00 : f32
      %158 = vector.broadcast %cst_51 : f32 to vector<8x128xf32>
      %159 = arith.addf %158, %157 : vector<8x128xf32>
      %160 = arith.divf %158, %159 : vector<8x128xf32>
      %161 = vector.extract_strided_slice %148 {offsets = [0, 256], sizes = [8, 128], strides = [1, 1]} : vector<8x512xf32> to vector<8x128xf32>
      %162 = math.tanh %161 : vector<8x128xf32>
      %163 = vector.extract_strided_slice %148 {offsets = [0, 384], sizes = [8, 128], strides = [1, 1]} : vector<8x512xf32> to vector<8x128xf32>
      %164 = arith.negf %163 : vector<8x128xf32>
      %165 = math.exp %164 : vector<8x128xf32>
      %cst_52 = arith.constant 1.000000e+00 : f32
      %166 = vector.broadcast %cst_52 : f32 to vector<8x128xf32>
      %167 = arith.addf %166, %165 : vector<8x128xf32>
      %168 = arith.divf %166, %167 : vector<8x128xf32>
      %169 = arith.mulf %160, %132 : vector<8x128xf32>
      %170 = arith.mulf %154, %162 : vector<8x128xf32>
      %171 = arith.addf %169, %170 : vector<8x128xf32>
      %172 = math.tanh %171 : vector<8x128xf32>
      %173 = arith.mulf %168, %172 : vector<8x128xf32>
      %174 = arith.addi %20, %c3_i32 : i32
      %175 = vector.broadcast %174 : i32 to vector<8x1xi32>
      %176 = arith.cmpi eq, %19, %175 : vector<8x1xi32>
      %177 = vector.shape_cast %176 : vector<8x1xi1> to vector<8x1xi1>
      %178 = vector.broadcast %177 : vector<8x1xi1> to vector<8x128xi1>
      %179 = arith.select %178, %173, %140 : vector<8x128xi1>, vector<8x128xf32>
      %c4_i32 = arith.constant 4 : i32
      %c8_i32_53 = arith.constant 8 : i32
      %180 = arith.muli %c4_i32, %c8_i32_53 : i32
      %181 = tpu.assume_multiple %180, 8 : i32
      %182 = arith.index_cast %181 : i32 to index
      %c0_54 = arith.constant 0 : index
      %183 = vector.load %arg15[%182, %c0_54] : memref<64x512xf32, #tpu.memory_space<vmem>>, vector<8x512xf32>
      %184 = arith.truncf %173 : vector<8x128xf32> to vector<8x128xbf16>
      %c0_55 = arith.constant 0 : index
      %c0_56 = arith.constant 0 : index
      %185 = vector.load %arg7[%c0_55, %c0_56] : memref<128x512xbf16, #tpu.memory_space<vmem>>, vector<128x512xbf16>
      %cst_57 = arith.constant dense<0.000000e+00> : vector<8x512xf32>
      %186 = tpu.matmul %184, %185, %cst_57 {dimension_numbers = #tpu.dot_dimension_numbers<[1], [0], [0], [1], [0, 0, 1, 1], [], []>} : vector<8x128xbf16>, vector<128x512xbf16>, vector<8x512xf32> -> vector<8x512xf32>
      %187 = arith.addf %183, %186 : vector<8x512xf32>
      %188 = vector.extract_strided_slice %187 {offsets = [0, 0], sizes = [8, 128], strides = [1, 1]} : vector<8x512xf32> to vector<8x128xf32>
      %189 = arith.negf %188 : vector<8x128xf32>
      %190 = math.exp %189 : vector<8x128xf32>
      %cst_58 = arith.constant 1.000000e+00 : f32
      %191 = vector.broadcast %cst_58 : f32 to vector<8x128xf32>
      %192 = arith.addf %191, %190 : vector<8x128xf32>
      %193 = arith.divf %191, %192 : vector<8x128xf32>
      %194 = vector.extract_strided_slice %187 {offsets = [0, 128], sizes = [8, 128], strides = [1, 1]} : vector<8x512xf32> to vector<8x128xf32>
      %195 = arith.negf %194 : vector<8x128xf32>
      %196 = math.exp %195 : vector<8x128xf32>
      %cst_59 = arith.constant 1.000000e+00 : f32
      %197 = vector.broadcast %cst_59 : f32 to vector<8x128xf32>
      %198 = arith.addf %197, %196 : vector<8x128xf32>
      %199 = arith.divf %197, %198 : vector<8x128xf32>
      %200 = vector.extract_strided_slice %187 {offsets = [0, 256], sizes = [8, 128], strides = [1, 1]} : vector<8x512xf32> to vector<8x128xf32>
      %201 = math.tanh %200 : vector<8x128xf32>
      %202 = vector.extract_strided_slice %187 {offsets = [0, 384], sizes = [8, 128], strides = [1, 1]} : vector<8x512xf32> to vector<8x128xf32>
      %203 = arith.negf %202 : vector<8x128xf32>
      %204 = math.exp %203 : vector<8x128xf32>
      %cst_60 = arith.constant 1.000000e+00 : f32
      %205 = vector.broadcast %cst_60 : f32 to vector<8x128xf32>
      %206 = arith.addf %205, %204 : vector<8x128xf32>
      %207 = arith.divf %205, %206 : vector<8x128xf32>
      %208 = arith.mulf %199, %171 : vector<8x128xf32>
      %209 = arith.mulf %193, %201 : vector<8x128xf32>
      %210 = arith.addf %208, %209 : vector<8x128xf32>
      %211 = math.tanh %210 : vector<8x128xf32>
      %212 = arith.mulf %207, %211 : vector<8x128xf32>
      %213 = arith.addi %20, %c4_i32 : i32
      %214 = vector.broadcast %213 : i32 to vector<8x1xi32>
      %215 = arith.cmpi eq, %19, %214 : vector<8x1xi32>
      %216 = vector.shape_cast %215 : vector<8x1xi1> to vector<8x1xi1>
      %217 = vector.broadcast %216 : vector<8x1xi1> to vector<8x128xi1>
      %218 = arith.select %217, %212, %179 : vector<8x128xi1>, vector<8x128xf32>
      %c5_i32 = arith.constant 5 : i32
      %c8_i32_61 = arith.constant 8 : i32
      %219 = arith.muli %c5_i32, %c8_i32_61 : i32
      %220 = tpu.assume_multiple %219, 8 : i32
      %221 = arith.index_cast %220 : i32 to index
      %c0_62 = arith.constant 0 : index
      %222 = vector.load %arg15[%221, %c0_62] : memref<64x512xf32, #tpu.memory_space<vmem>>, vector<8x512xf32>
      %223 = arith.truncf %212 : vector<8x128xf32> to vector<8x128xbf16>
      %c0_63 = arith.constant 0 : index
      %c0_64 = arith.constant 0 : index
      %224 = vector.load %arg7[%c0_63, %c0_64] : memref<128x512xbf16, #tpu.memory_space<vmem>>, vector<128x512xbf16>
      %cst_65 = arith.constant dense<0.000000e+00> : vector<8x512xf32>
      %225 = tpu.matmul %223, %224, %cst_65 {dimension_numbers = #tpu.dot_dimension_numbers<[1], [0], [0], [1], [0, 0, 1, 1], [], []>} : vector<8x128xbf16>, vector<128x512xbf16>, vector<8x512xf32> -> vector<8x512xf32>
      %226 = arith.addf %222, %225 : vector<8x512xf32>
      %227 = vector.extract_strided_slice %226 {offsets = [0, 0], sizes = [8, 128], strides = [1, 1]} : vector<8x512xf32> to vector<8x128xf32>
      %228 = arith.negf %227 : vector<8x128xf32>
      %229 = math.exp %228 : vector<8x128xf32>
      %cst_66 = arith.constant 1.000000e+00 : f32
      %230 = vector.broadcast %cst_66 : f32 to vector<8x128xf32>
      %231 = arith.addf %230, %229 : vector<8x128xf32>
      %232 = arith.divf %230, %231 : vector<8x128xf32>
      %233 = vector.extract_strided_slice %226 {offsets = [0, 128], sizes = [8, 128], strides = [1, 1]} : vector<8x512xf32> to vector<8x128xf32>
      %234 = arith.negf %233 : vector<8x128xf32>
      %235 = math.exp %234 : vector<8x128xf32>
      %cst_67 = arith.constant 1.000000e+00 : f32
      %236 = vector.broadcast %cst_67 : f32 to vector<8x128xf32>
      %237 = arith.addf %236, %235 : vector<8x128xf32>
      %238 = arith.divf %236, %237 : vector<8x128xf32>
      %239 = vector.extract_strided_slice %226 {offsets = [0, 256], sizes = [8, 128], strides = [1, 1]} : vector<8x512xf32> to vector<8x128xf32>
      %240 = math.tanh %239 : vector<8x128xf32>
      %241 = vector.extract_strided_slice %226 {offsets = [0, 384], sizes = [8, 128], strides = [1, 1]} : vector<8x512xf32> to vector<8x128xf32>
      %242 = arith.negf %241 : vector<8x128xf32>
      %243 = math.exp %242 : vector<8x128xf32>
      %cst_68 = arith.constant 1.000000e+00 : f32
      %244 = vector.broadcast %cst_68 : f32 to vector<8x128xf32>
      %245 = arith.addf %244, %243 : vector<8x128xf32>
      %246 = arith.divf %244, %245 : vector<8x128xf32>
      %247 = arith.mulf %238, %210 : vector<8x128xf32>
      %248 = arith.mulf %232, %240 : vector<8x128xf32>
      %249 = arith.addf %247, %248 : vector<8x128xf32>
      %250 = math.tanh %249 : vector<8x128xf32>
      %251 = arith.mulf %246, %250 : vector<8x128xf32>
      %252 = arith.addi %20, %c5_i32 : i32
      %253 = vector.broadcast %252 : i32 to vector<8x1xi32>
      %254 = arith.cmpi eq, %19, %253 : vector<8x1xi32>
      %255 = vector.shape_cast %254 : vector<8x1xi1> to vector<8x1xi1>
      %256 = vector.broadcast %255 : vector<8x1xi1> to vector<8x128xi1>
      %257 = arith.select %256, %251, %218 : vector<8x128xi1>, vector<8x128xf32>
      %c6_i32 = arith.constant 6 : i32
      %c8_i32_69 = arith.constant 8 : i32
      %258 = arith.muli %c6_i32, %c8_i32_69 : i32
      %259 = tpu.assume_multiple %258, 8 : i32
      %260 = arith.index_cast %259 : i32 to index
      %c0_70 = arith.constant 0 : index
      %261 = vector.load %arg15[%260, %c0_70] : memref<64x512xf32, #tpu.memory_space<vmem>>, vector<8x512xf32>
      %262 = arith.truncf %251 : vector<8x128xf32> to vector<8x128xbf16>
      %c0_71 = arith.constant 0 : index
      %c0_72 = arith.constant 0 : index
      %263 = vector.load %arg7[%c0_71, %c0_72] : memref<128x512xbf16, #tpu.memory_space<vmem>>, vector<128x512xbf16>
      %cst_73 = arith.constant dense<0.000000e+00> : vector<8x512xf32>
      %264 = tpu.matmul %262, %263, %cst_73 {dimension_numbers = #tpu.dot_dimension_numbers<[1], [0], [0], [1], [0, 0, 1, 1], [], []>} : vector<8x128xbf16>, vector<128x512xbf16>, vector<8x512xf32> -> vector<8x512xf32>
      %265 = arith.addf %261, %264 : vector<8x512xf32>
      %266 = vector.extract_strided_slice %265 {offsets = [0, 0], sizes = [8, 128], strides = [1, 1]} : vector<8x512xf32> to vector<8x128xf32>
      %267 = arith.negf %266 : vector<8x128xf32>
      %268 = math.exp %267 : vector<8x128xf32>
      %cst_74 = arith.constant 1.000000e+00 : f32
      %269 = vector.broadcast %cst_74 : f32 to vector<8x128xf32>
      %270 = arith.addf %269, %268 : vector<8x128xf32>
      %271 = arith.divf %269, %270 : vector<8x128xf32>
      %272 = vector.extract_strided_slice %265 {offsets = [0, 128], sizes = [8, 128], strides = [1, 1]} : vector<8x512xf32> to vector<8x128xf32>
      %273 = arith.negf %272 : vector<8x128xf32>
      %274 = math.exp %273 : vector<8x128xf32>
      %cst_75 = arith.constant 1.000000e+00 : f32
      %275 = vector.broadcast %cst_75 : f32 to vector<8x128xf32>
      %276 = arith.addf %275, %274 : vector<8x128xf32>
      %277 = arith.divf %275, %276 : vector<8x128xf32>
      %278 = vector.extract_strided_slice %265 {offsets = [0, 256], sizes = [8, 128], strides = [1, 1]} : vector<8x512xf32> to vector<8x128xf32>
      %279 = math.tanh %278 : vector<8x128xf32>
      %280 = vector.extract_strided_slice %265 {offsets = [0, 384], sizes = [8, 128], strides = [1, 1]} : vector<8x512xf32> to vector<8x128xf32>
      %281 = arith.negf %280 : vector<8x128xf32>
      %282 = math.exp %281 : vector<8x128xf32>
      %cst_76 = arith.constant 1.000000e+00 : f32
      %283 = vector.broadcast %cst_76 : f32 to vector<8x128xf32>
      %284 = arith.addf %283, %282 : vector<8x128xf32>
      %285 = arith.divf %283, %284 : vector<8x128xf32>
      %286 = arith.mulf %277, %249 : vector<8x128xf32>
      %287 = arith.mulf %271, %279 : vector<8x128xf32>
      %288 = arith.addf %286, %287 : vector<8x128xf32>
      %289 = math.tanh %288 : vector<8x128xf32>
      %290 = arith.mulf %285, %289 : vector<8x128xf32>
      %291 = arith.addi %20, %c6_i32 : i32
      %292 = vector.broadcast %291 : i32 to vector<8x1xi32>
      %293 = arith.cmpi eq, %19, %292 : vector<8x1xi32>
      %294 = vector.shape_cast %293 : vector<8x1xi1> to vector<8x1xi1>
      %295 = vector.broadcast %294 : vector<8x1xi1> to vector<8x128xi1>
      %296 = arith.select %295, %290, %257 : vector<8x128xi1>, vector<8x128xf32>
      %c7_i32 = arith.constant 7 : i32
      %c8_i32_77 = arith.constant 8 : i32
      %297 = arith.muli %c7_i32, %c8_i32_77 : i32
      %298 = tpu.assume_multiple %297, 8 : i32
      %299 = arith.index_cast %298 : i32 to index
      %c0_78 = arith.constant 0 : index
      %300 = vector.load %arg15[%299, %c0_78] : memref<64x512xf32, #tpu.memory_space<vmem>>, vector<8x512xf32>
      %301 = arith.truncf %290 : vector<8x128xf32> to vector<8x128xbf16>
      %c0_79 = arith.constant 0 : index
      %c0_80 = arith.constant 0 : index
      %302 = vector.load %arg7[%c0_79, %c0_80] : memref<128x512xbf16, #tpu.memory_space<vmem>>, vector<128x512xbf16>
      %cst_81 = arith.constant dense<0.000000e+00> : vector<8x512xf32>
      %303 = tpu.matmul %301, %302, %cst_81 {dimension_numbers = #tpu.dot_dimension_numbers<[1], [0], [0], [1], [0, 0, 1, 1], [], []>} : vector<8x128xbf16>, vector<128x512xbf16>, vector<8x512xf32> -> vector<8x512xf32>
      %304 = arith.addf %300, %303 : vector<8x512xf32>
      %305 = vector.extract_strided_slice %304 {offsets = [0, 0], sizes = [8, 128], strides = [1, 1]} : vector<8x512xf32> to vector<8x128xf32>
      %306 = arith.negf %305 : vector<8x128xf32>
      %307 = math.exp %306 : vector<8x128xf32>
      %cst_82 = arith.constant 1.000000e+00 : f32
      %308 = vector.broadcast %cst_82 : f32 to vector<8x128xf32>
      %309 = arith.addf %308, %307 : vector<8x128xf32>
      %310 = arith.divf %308, %309 : vector<8x128xf32>
      %311 = vector.extract_strided_slice %304 {offsets = [0, 128], sizes = [8, 128], strides = [1, 1]} : vector<8x512xf32> to vector<8x128xf32>
      %312 = arith.negf %311 : vector<8x128xf32>
      %313 = math.exp %312 : vector<8x128xf32>
      %cst_83 = arith.constant 1.000000e+00 : f32
      %314 = vector.broadcast %cst_83 : f32 to vector<8x128xf32>
      %315 = arith.addf %314, %313 : vector<8x128xf32>
      %316 = arith.divf %314, %315 : vector<8x128xf32>
      %317 = vector.extract_strided_slice %304 {offsets = [0, 256], sizes = [8, 128], strides = [1, 1]} : vector<8x512xf32> to vector<8x128xf32>
      %318 = math.tanh %317 : vector<8x128xf32>
      %319 = vector.extract_strided_slice %304 {offsets = [0, 384], sizes = [8, 128], strides = [1, 1]} : vector<8x512xf32> to vector<8x128xf32>
      %320 = arith.negf %319 : vector<8x128xf32>
      %321 = math.exp %320 : vector<8x128xf32>
      %cst_84 = arith.constant 1.000000e+00 : f32
      %322 = vector.broadcast %cst_84 : f32 to vector<8x128xf32>
      %323 = arith.addf %322, %321 : vector<8x128xf32>
      %324 = arith.divf %322, %323 : vector<8x128xf32>
      %325 = arith.mulf %316, %288 : vector<8x128xf32>
      %326 = arith.mulf %310, %318 : vector<8x128xf32>
      %327 = arith.addf %325, %326 : vector<8x128xf32>
      %328 = math.tanh %327 : vector<8x128xf32>
      %329 = arith.mulf %324, %328 : vector<8x128xf32>
      %330 = arith.addi %20, %c7_i32 : i32
      %331 = vector.broadcast %330 : i32 to vector<8x1xi32>
      %332 = arith.cmpi eq, %19, %331 : vector<8x1xi32>
      %333 = vector.shape_cast %332 : vector<8x1xi1> to vector<8x1xi1>
      %334 = vector.broadcast %333 : vector<8x1xi1> to vector<8x128xi1>
      %335 = arith.select %334, %329, %296 : vector<8x128xi1>, vector<8x128xf32>
      %c8_i32_85 = arith.constant 8 : i32
      %c0_86 = arith.constant 0 : index
      %c0_87 = arith.constant 0 : index
      %336 = vector.load %arg12[%c0_86, %c0_87] : memref<8x128xf32, #tpu.memory_space<vmem>>, vector<8x128xf32>
      tpu.vector_store %arg12[%c0_86, %c0_87], %329 {strides = array<i32>} : memref<8x128xf32, #tpu.memory_space<vmem>>, vector<8x128xf32>,
      %c0_88 = arith.constant 0 : index
      %c0_89 = arith.constant 0 : index
      %337 = vector.load %arg13[%c0_88, %c0_89] : memref<8x128xf32, #tpu.memory_space<vmem>>, vector<8x128xf32>
      tpu.vector_store %arg13[%c0_88, %c0_89], %327 {strides = array<i32>} : memref<8x128xf32, #tpu.memory_space<vmem>>, vector<8x128xf32>,
      %c0_90 = arith.constant 0 : index
      %c0_91 = arith.constant 0 : index
      %338 = vector.load %arg14[%c0_90, %c0_91] : memref<8x128xf32, #tpu.memory_space<vmem>>, vector<8x128xf32>
      tpu.vector_store %arg14[%c0_90, %c0_91], %335 {strides = array<i32>} : memref<8x128xf32, #tpu.memory_space<vmem>>, vector<8x128xf32>,
    } else {
    }
    %c0_i32_2 = arith.constant 0 : i32
    %8 = arith.cmpi eq, %arg1, %c0_i32_2 : i32
    %9 = arith.extui %8 : i1 to i32
    %c0_i32_3 = arith.constant 0 : i32
    %10 = arith.cmpi ne, %9, %c0_i32_3 : i32
    scf.if %10 {
      %c0 = arith.constant 0 : index
      %c0_4 = arith.constant 0 : index
      %11 = vector.load %arg14[%c0, %c0_4] : memref<8x128xf32, #tpu.memory_space<vmem>>, vector<8x128xf32>
      %12 = arith.truncf %11 : vector<8x128xf32> to vector<8x128xbf16>
      %c0_5 = arith.constant 0 : index
      %c0_6 = arith.constant 0 : index
      %13 = vector.load %arg9[%c0_5, %c0_6] : memref<128x128xbf16, #tpu.memory_space<vmem>>, vector<128x128xbf16>
      %cst = arith.constant dense<0.000000e+00> : vector<8x128xf32>
      %14 = tpu.matmul %12, %13, %cst {dimension_numbers = #tpu.dot_dimension_numbers<[1], [0], [0], [1], [0, 0, 1, 1], [], []>} : vector<8x128xbf16>, vector<128x128xbf16>, vector<8x128xf32> -> vector<8x128xf32>
      %c0_7 = arith.constant 0 : index
      %c0_8 = arith.constant 0 : index
      %15 = vector.load %arg10[%c0_7, %c0_8] : memref<1x128xf32, #tpu.memory_space<vmem>>, vector<1x128xf32>
      %16 = vector.broadcast %15 : vector<1x128xf32> to vector<8x128xf32>
      %17 = arith.addf %14, %16 : vector<8x128xf32>
      %c0_9 = arith.constant 0 : index
      %c0_10 = arith.constant 0 : index
      %18 = vector.load %arg11[%c0_9, %c0_10] : memref<8x128xf32, #tpu.memory_space<vmem>>, vector<8x128xf32>
      tpu.vector_store %arg11[%c0_9, %c0_10], %17 {strides = array<i32>} : memref<8x128xf32, #tpu.memory_space<vmem>>, vector<8x128xf32>,
    } else {
    }
    return
  }
  func.func @transform_0(%arg0: i32, %arg1: i32, %arg2: memref<1xi32, #tpu.memory_space<smem>>, %arg3: memref<1xi32, #tpu.memory_space<smem>>) -> (i32, i32) {
    %c0_i32 = arith.constant 0 : i32
    %c0_i32_0 = arith.constant 0 : i32
    return %arg0, %c0_i32 : i32, i32
  }
  func.func @transform_1(%arg0: i32, %arg1: i32, %arg2: memref<1xi32, #tpu.memory_space<smem>>, %arg3: memref<1xi32, #tpu.memory_space<smem>>) -> (i32, i32, i32) {
    %0 = arith.index_cast %arg0 : i32 to index
    %1 = memref.load %arg3[%0] : memref<1xi32, #tpu.memory_space<smem>>
    %2 = arith.minsi %arg1, %1 : i32
    %c0_i32 = arith.constant 0 : i32
    %c0_i32_0 = arith.constant 0 : i32
    return %arg0, %2, %c0_i32 : i32, i32, i32
  }
  func.func @transform_2(%arg0: i32, %arg1: i32, %arg2: memref<1xi32, #tpu.memory_space<smem>>, %arg3: memref<1xi32, #tpu.memory_space<smem>>) -> (i32, i32) {
    %c0_i32 = arith.constant 0 : i32
    %c0_i32_0 = arith.constant 0 : i32
    %c0_i32_1 = arith.constant 0 : i32
    return %c0_i32, %c0_i32_0 : i32, i32
  }
  func.func @transform_3(%arg0: i32, %arg1: i32, %arg2: memref<1xi32, #tpu.memory_space<smem>>, %arg3: memref<1xi32, #tpu.memory_space<smem>>) -> (i32, i32) {
    %c0_i32 = arith.constant 0 : i32
    %c0_i32_0 = arith.constant 0 : i32
    %c0_i32_1 = arith.constant 0 : i32
    return %c0_i32, %c0_i32_0 : i32, i32
  }
  func.func @transform_4(%arg0: i32, %arg1: i32, %arg2: memref<1xi32, #tpu.memory_space<smem>>, %arg3: memref<1xi32, #tpu.memory_space<smem>>) -> (i32, i32) {
    %c0_i32 = arith.constant 0 : i32
    %c0_i32_0 = arith.constant 0 : i32
    %c0_i32_1 = arith.constant 0 : i32
    return %c0_i32, %c0_i32_0 : i32, i32
  }
  func.func @transform_5(%arg0: i32, %arg1: i32, %arg2: memref<1xi32, #tpu.memory_space<smem>>, %arg3: memref<1xi32, #tpu.memory_space<smem>>) -> (i32, i32) {
    %c0_i32 = arith.constant 0 : i32
    %c0_i32_0 = arith.constant 0 : i32
    %c0_i32_1 = arith.constant 0 : i32
    return %c0_i32, %c0_i32_0 : i32, i32
  }
  func.func @transform_6(%arg0: i32, %arg1: i32, %arg2: memref<1xi32, #tpu.memory_space<smem>>, %arg3: memref<1xi32, #tpu.memory_space<smem>>) -> (i32, i32) {
    %c0_i32 = arith.constant 0 : i32
    %c0_i32_0 = arith.constant 0 : i32
    %c0_i32_1 = arith.constant 0 : i32
    return %c0_i32, %c0_i32_0 : i32, i32
  }
  func.func @transform_7(%arg0: i32, %arg1: i32, %arg2: memref<1xi32, #tpu.memory_space<smem>>, %arg3: memref<1xi32, #tpu.memory_space<smem>>) -> (i32, i32) {
    %c0_i32 = arith.constant 0 : i32
    %c0_i32_0 = arith.constant 0 : i32
    return %arg0, %c0_i32 : i32, i32
  }
}

</mosaic_0001>

<bundles_post_ra>
// kernel: sentence_classifier_forward.1
= control target key start
LH: loop header
LB: loop body
LE: loop exit
PB: predicated region body
PF: predicated region fallthrough
CT: control target
= control target key end

     0   :  { %v3261_v0 = vmov 0.0   ;;  %s3251_s0 = inlined_call_operand.<no memory space> [shape: s32[1], index: 0, kind: input, shape index: {}]   ;;  %s3252_s1 = inlined_call_operand.<no memory space> [shape: s32[1], index: 1, kind: input, shape index: {}]   ;;  %s3253_s2 = inlined_call_operand.vmem [shape: s32[8,1], index: 2, kind: input, shape index: {}]   ;;  %s3254_s4 = inlined_call_operand.vmem [shape: bf16[128,512], index: 4, kind: input, shape index: {}]   ;;  %s3255_s5 = inlined_call_operand.vmem [shape: bf16[128,512], index: 5, kind: input, shape index: {}]   ;;  %s3256_s6 = inlined_call_operand.vmem [shape: f32[1,512], index: 6, kind: input, shape index: {}]   ;;  %s3257_s7 = inlined_call_operand.vmem [shape: bf16[128,128], index: 7, kind: input, shape index: {}]   ;;  %s3258_s8 = inlined_call_operand.vmem [shape: f32[1,128], index: 8, kind: input, shape index: {}]   ;;  %s3259_s9 = inlined_call_operand.vmem [shape: f32[8,128], index: 9, kind: output, shape index: {}]   ;;  %s3260_s3 = inlined_call_operand.vmem [shape: bf16[1,64,128], index: 3, kind: input, shape index: {}]  }
   0x1   :  { %p1848_p0 = scmp.gt.s32.totalorder %s3252_s1, 0  ;;  %67 = vst [vmem:[#allocation2] sm:$0xff] %v3261_v0  ;;  %68 = vst [vmem:[#allocation3] sm:$0xff] %v3261_v0  ;;  %p1852_p2 = scmp.le.s32.totalorder %s3251_s0, 0 }
   0x2   :  { %69 = vst [vmem:[#allocation4] sm:$0xff] %v3261_v0 }
   0x3   :  { %s3312_s1 = smov (%p1848_p0, %s3252_s1), 0  ;;  %74 = sbr.rel (%p1852_p2) target bundleno = 2157 (0x86d), region = 37 }
   0x4   :  { %s1849_s13 = sshll.u32 %s3312_s1, 3 }
   0x5   :  { %p54_p1 = scmp.lt.s32.totalorder %s1849_s13, 7 }
   0x7   :  { %s3314_s13 = smov (!%p54_p1, %s1849_s13), 7 }
   0x8   :  { %s1850_s14 = sshll.u32 %s3314_s13, 2 }
   0x9   :  { %s2322_s17 = scalar_lea.vmem %s3260_s3, %s1850_s14 }
   0xa   :  { %v1988_v1 = vld [vmem:[%s3254_s4 + $0x4] ss:$16 sps:$4 sm:$0xff]   ;;  %v1990_v2 = vld [vmem:[%s3254_s4 + $0xc] ss:$16 sps:$4 sm:$0xff]   ;;  %v3263_v3 = vmov 0  }
   0xb   :  { %353 = vmatprep.mubr.bf16.mxu0 %v3263_v3  ;;  %426 = vmatprep.mubr.bf16.mxu1 %v3263_v3  ;;  %v1992_v4 = vld [vmem:[%s3254_s4] ss:$16 sps:$4 sm:$0xff]   ;;  %v1993_v5 = vld [vmem:[%s3254_s4 + $0x8] ss:$16 sps:$4 sm:$0xff]   ;;  %v1994_v6 = vld [vmem:[%s3254_s4 + $0x24] ss:$16 sps:$4 sm:$0xff]  }
   0xc   :  { %321 = vmatprep.subr.bf16.mxu0 %v1988_v1  ;;  %1986 = vset.pattern.permute.xlu0 %v3263_v3  ;;  %v1996_v7 = vld [vmem:[%s3254_s4 + $0x2c] ss:$16 sps:$4 sm:$0xff]   ;;  %v1998_v8 = vld [vmem:[%s3254_s4 + $0x20] ss:$16 sps:$4 sm:$0xff]   ;;  %v1999_v9 = vld [vmem:[%s3254_s4 + $0x28] ss:$16 sps:$4 sm:$0xff]  }
   0xd   :  { %394 = vmatprep.subr.bf16.mxu1 %v1990_v2  ;;  %1987 = vset.pattern.permute.xlu1 %v3263_v3  ;;  %v2000_v10 = vld [vmem:[%s3254_s4 + $0x44] ss:$16 sps:$4 sm:$0xff]   ;;  %v2002_v11 = vld [vmem:[%s3254_s4 + $0x4c] ss:$16 sps:$4 sm:$0xff]   ;;  %v2004_v12 = vld [vmem:[%s3254_s4 + $0x40] ss:$16 sps:$4 sm:$0xff]  }
   0xe   :  { %322 = vmatpush1.bf16.msra.mxu0 %v1992_v4  ;;  %395 = vmatpush1.bf16.msra.mxu1 %v1993_v5  ;;  %v2005_v13 = vld [vmem:[%s3254_s4 + $0x48] ss:$16 sps:$4 sm:$0xff]   ;;  %v2006_v14 = vld [vmem:[%s3254_s4 + $0x64] ss:$16 sps:$4 sm:$0xff]   ;;  %v2008_v15 = vld [vmem:[%s3254_s4 + $0x6c] ss:$16 sps:$4 sm:$0xff]  }
   0xf   :  { %323 = vmatprep.subr.bf16.mxu0 %v1994_v6  ;;  %396 = vmatprep.subr.bf16.mxu1 %v1996_v7  ;;  %v2010_v16 = vld [vmem:[%s3254_s4 + $0x60] ss:$16 sps:$4 sm:$0xff]   ;;  %v2011_v17 = vld [vmem:[%s3254_s4 + $0x68] ss:$16 sps:$4 sm:$0xff]   ;;  %v2012_v18 = vld [vmem:[%s3254_s4 + $0x84] ss:$16 sps:$4 sm:$0xff]  }
  0x10   :  { %v2014_v19 = vld [vmem:[%s3254_s4 + $0x8c] ss:$16 sps:$4 sm:$0xff]   ;;  %v2016_v20 = vld [vmem:[%s3254_s4 + $0x80] ss:$16 sps:$4 sm:$0xff]   ;;  %v2017_v21 = vld [vmem:[%s3254_s4 + $0x88] ss:$16 sps:$4 sm:$0xff]  }
  0x11   :  { %v2018_v22 = vld [vmem:[%s3254_s4 + $0xa4] ss:$16 sps:$4 sm:$0xff]   ;;  %v2020_v23 = vld [vmem:[%s3254_s4 + $0xac] ss:$16 sps:$4 sm:$0xff]   ;;  %v2022_v24 = vld [vmem:[%s3254_s4 + $0xa0] ss:$16 sps:$4 sm:$0xff]  }
  0x12   :  { %324 = vmatpush1.bf16.msra.mxu0 %v1998_v8  ;;  %397 = vmatpush1.bf16.msra.mxu1 %v1999_v9  ;;  %v2023_v25 = vld [vmem:[%s3254_s4 + $0xa8] ss:$16 sps:$4 sm:$0xff]   ;;  %v2024_v26 = vld [vmem:[%s3254_s4 + $0xc4] ss:$16 sps:$4 sm:$0xff]   ;;  %v2026_v27 = vld [vmem:[%s3254_s4 + $0xcc] ss:$16 sps:$4 sm:$0xff]  }
  0x13   :  { %325 = vmatprep.subr.bf16.mxu0 %v2000_v10  ;;  %398 = vmatprep.subr.bf16.mxu1 %v2002_v11  ;;  %v2028_v28 = vld [vmem:[%s3254_s4 + $0xc0] ss:$16 sps:$4 sm:$0xff]   ;;  %v2029_v29 = vld [vmem:[%s3254_s4 + $0xc8] ss:$16 sps:$4 sm:$0xff]   ;;  %v2030_v30 = vld [vmem:[%s3254_s4 + $0xe4] ss:$16 sps:$4 sm:$0xff]  }
  0x14   :  { %v2032_v31 = vld [vmem:[%s3254_s4 + $0xec] ss:$16 sps:$4 sm:$0xff]   ;;  %v2034_v32 = vld [vmem:[%s3254_s4 + $0xe0] ss:$16 sps:$4 sm:$0xff]   ;;  %v2035_v33 = vld [vmem:[%s3254_s4 + $0xe8] ss:$16 sps:$4 sm:$0xff]  }
  0x15   :  { %v2430_v34 = vld [vmem:[%s3255_s5 + $0x4] ss:$16 sps:$4 sm:$0xff]   ;;  %v2435_v35 = vld [vmem:[%s3255_s5 + $0xc] ss:$16 sps:$4 sm:$0xff]   ;;  %v2441_v37 = vld [vmem:[%s3255_s5] ss:$16 sps:$4 sm:$0xff]  }
  0x16   :  { %326 = vmatpush1.bf16.msra.mxu0 %v2004_v12  ;;  %399 = vmatpush1.bf16.msra.mxu1 %v2005_v13  ;;  %v2036_v36 = vld [vmem:[%s2322_s17] sm:$0xff]   ;;  %v2446_v38 = vld [vmem:[%s3255_s5 + $0x8] ss:$16 sps:$4 sm:$0xff]   ;;  %v2458_v40 = vld [vmem:[%s3255_s5 + $0x2c] ss:$16 sps:$4 sm:$0xff]   ;;  %v117_v13 = vlaneseq }
  0x17   :  { %327 = vmatprep.subr.bf16.mxu0 %v2006_v14  ;;  %400 = vmatprep.subr.bf16.mxu1 %v2008_v15  ;;  %v2453_v39 = vld [vmem:[%s3255_s5 + $0x24] ss:$16 sps:$4 sm:$0xff]   ;;  %v2463_v41 = vld [vmem:[%s3255_s5 + $0x20] ss:$16 sps:$4 sm:$0xff]   ;;  %v2470_v42 = vld [vmem:[%s3255_s5 + $0x28] ss:$16 sps:$4 sm:$0xff]  }
  0x18   :  { %v2477_v43 = vld [vmem:[%s3255_s5 + $0x44] ss:$16 sps:$4 sm:$0xff]   ;;  %v2482_v44 = vld [vmem:[%s3255_s5 + $0x4c] ss:$16 sps:$4 sm:$0xff]   ;;  %v2490_v46 = vld [vmem:[%s3255_s5 + $0x40] ss:$16 sps:$4 sm:$0xff]  }
  0x19   :  { %v2049_v45 = vld [vmem:[%s2322_s17 + $0x8] sm:$0xff]   ;;  %v2502_v48 = vld [vmem:[%s3255_s5 + $0x64] ss:$16 sps:$4 sm:$0xff]   ;;  %v2514_v50 = vld [vmem:[%s3255_s5 + $0x60] ss:$16 sps:$4 sm:$0xff]   ;;  %v118_v14 = vshrl.u32 %v117_v13, 7 }
  0x1a   :  { %328 = vmatpush1.bf16.msra.mxu0 %v2010_v16  ;;  %401 = vmatpush1.bf16.msra.mxu1 %v2011_v17  ;;  %v2495_v47 = vld [vmem:[%s3255_s5 + $0x48] ss:$16 sps:$4 sm:$0xff]   ;;  %v2509_v49 = vld [vmem:[%s3255_s5 + $0x6c] ss:$16 sps:$4 sm:$0xff]   ;;  %v2526_v52 = vld [vmem:[%s3255_s5 + $0x84] ss:$16 sps:$4 sm:$0xff]  }
  0x1b   :  { %329 = vmatprep.subr.bf16.mxu0 %v2012_v18  ;;  %402 = vmatprep.subr.bf16.mxu1 %v2014_v19  ;;  %v2519_v51 = vld [vmem:[%s3255_s5 + $0x68] ss:$16 sps:$4 sm:$0xff]   ;;  %v2533_v53 = vld [vmem:[%s3255_s5 + $0x8c] ss:$16 sps:$4 sm:$0xff]   ;;  %v2062_v54 = vld [vmem:[%s2322_s17 + $0x10] sm:$0xff]   ;;  %v127_v15 = vsub.s32 2, %v118_v14 }
  0x1c   :  { %v2541_v55 = vld [vmem:[%s3253_s2] sm:$0xff]  ;;  %v2553_v57 = vld [vmem:[%s3255_s5 + $0x88] ss:$16 sps:$4 sm:$0xff]   ;;  %v2566_v59 = vld [vmem:[%s3255_s5 + $0xac] ss:$16 sps:$4 sm:$0xff]   ;;  %v131_v16 = vsub.s32 3, %v118_v14 }
  0x1d   :  { %v2548_v56 = vld [vmem:[%s3255_s5 + $0x80] ss:$16 sps:$4 sm:$0xff]   ;;  %vm815_vm0 = vcmp.eq.s32.totalorder %v2541_v55, 0  ;;  %v2561_v58 = vld [vmem:[%s3255_s5 + $0xa4] ss:$16 sps:$4 sm:$0xff]   ;;  %v2075_v2 = vld [vmem:[%s2322_s17 + $0x18] sm:$0xff]  }
  0x1e   :  { %330 = vmatpush1.bf16.msra.mxu0 %v2016_v20  ;;  %403 = vmatpush1.bf16.msra.mxu1 %v2017_v21  ;;  %v816_v60 = vsel %vm815_vm0, 1, %v3263_v3  ;;  %v2574_v61 = vld [vmem:[%s3255_s5 + $0xa0] ss:$16 sps:$4 sm:$0xff]   ;;  %v2579_v62 = vld [vmem:[%s3255_s5 + $0xa8] ss:$16 sps:$4 sm:$0xff]   ;;  %vm942_vm1 = vcmp.eq.s32.totalorder %v2541_v55, 1 }
  0x1f   :  { %331 = vmatprep.subr.bf16.mxu0 %v2018_v22  ;;  %404 = vmatprep.subr.bf16.mxu1 %v2020_v23  ;;  %v2586_v63 = vld [vmem:[%s3255_s5 + $0xc4] ss:$16 sps:$4 sm:$0xff]   ;;  %v2591_v1 = vld [vmem:[%s3255_s5 + $0xcc] ss:$16 sps:$4 sm:$0xff]   ;;  %v2601_v4 = vld [vmem:[%s3255_s5 + $0xc0] ss:$16 sps:$4 sm:$0xff]  }
  0x20   :  { %818 = vperm.xlu0 %1986, %v816_v60   ;;  %v2606_v5 = vld [vmem:[%s3255_s5 + $0xc8] ss:$16 sps:$4 sm:$0xff]   ;;  %v2613_v6 = vld [vmem:[%s3255_s5 + $0xe4] ss:$16 sps:$4 sm:$0xff]   ;;  %v2618_v7 = vld [vmem:[%s3255_s5 + $0xec] ss:$16 sps:$4 sm:$0xff]  }
  0x21   :  { %v2625_v8 = vld [vmem:[%s3255_s5 + $0xe0] ss:$16 sps:$4 sm:$0xff]   ;;  %v2630_v9 = vld [vmem:[%s3255_s5 + $0xe8] ss:$16 sps:$4 sm:$0xff]   ;;  %v943_v12 = vsel %vm942_vm1, 1, %v3263_v3  ;;  %v119_v17 = vsub.s32 0, %v118_v14 }
  0x22   :  { %332 = vmatpush1.bf16.msra.mxu0 %v2022_v24  ;;  %405 = vmatpush1.bf16.msra.mxu1 %v2023_v25  ;;  %v501_v10 = vld [vmem:[#allocation2] sm:$0xff]  ;;  %v123_v19 = vsub.s32 1, %v118_v14  ;;  %vm1069_vm2 = vcmp.eq.s32.totalorder %v2541_v55, 2  ;;  %vm1196_vm5 = vcmp.eq.s32.totalorder %v2541_v55, 3  ;;  %vm1323_vm7 = vcmp.eq.s32.totalorder %v2541_v55, 4 }
  0x23   :  { %333 = vmatprep.subr.bf16.mxu0 %v2024_v26  ;;  %406 = vmatprep.subr.bf16.mxu1 %v2026_v27  ;;  %v511_v11 = vpack.c.bf16 %v501_v10, %v501_v10  ;;  %v115_v18 = vld [vmem:[%s3256_s6] sm:$0xf]  ;;  %vm1450_vm9 = vcmp.eq.s32.totalorder %v2541_v55, 5 }
  0x24   :  { %945 = vperm.xlu0 %1986, %v943_v12   ;;  %v2679_v20 = vrot.slane %v115_v18, %v127_v15  ;;  %v2685_v23 = vrot.slane %v115_v18, %v131_v16  ;;  %v120_v24 = vrot.slane %v115_v18, %v119_v17  ;;  %v124_v27 = vrot.slane %v115_v18, %v123_v19 }
  0x26   :  { %334 = vmatpush1.bf16.msra.mxu0 %v2028_v28  ;;  %407 = vmatpush1.bf16.msra.mxu1 %v2029_v29 }
  0x27   :  { %335 = vmatprep.subr.bf16.mxu0 %v2030_v30  ;;  %408 = vmatprep.subr.bf16.mxu1 %v2032_v31 }
  0x2a   :  { %336 = vmatpush1.bf16.msra.mxu0 %v2034_v32  ;;  %409 = vmatpush1.bf16.msra.mxu1 %v2035_v33 }
  0x2b   :  { %704 = vmatprep.subr.bf16.mxu0 %v2430_v34  ;;  %745 = vmatprep.subr.bf16.mxu1 %v2435_v35 }
  0x2d   :  { %354 = vmatmul.mubr.bf16.vlgmr.msra.gmra.mrb[0].mxu0 %v2036_v36  ;;  %427 = vmatmul.mubr.bf16.vlgmr.msra.gmra.mrb[0].mxu1 %v2036_v36 }
  0x2e   :  { %705 = vmatpush1.bf16.msra.mxu0 %v2441_v37  ;;  %746 = vmatpush1.bf16.msra.mxu1 %v2446_v38 }
  0x2f   :  { %706 = vmatprep.subr.bf16.mxu0 %v2453_v39  ;;  %747 = vmatprep.subr.bf16.mxu1 %v2458_v40 }
  0x30   :  { %363 = vmatprep.mubr.bf16.mxu0 %v3263_v3  ;;  %436 = vmatprep.mubr.bf16.mxu1 %v3263_v3 }
  0x32   :  { %707 = vmatpush1.bf16.msra.mxu0 %v2463_v41  ;;  %748 = vmatpush1.bf16.msra.mxu1 %v2470_v42 }
  0x33   :  { %708 = vmatprep.subr.bf16.mxu0 %v2477_v43  ;;  %749 = vmatprep.subr.bf16.mxu1 %v2482_v44 }
  0x35   :  { %364 = vmatmul.mubr.bf16.gmra.mrb[4].mxu0 %v2049_v45  ;;  %437 = vmatmul.mubr.bf16.gmra.mrb[4].mxu1 %v2049_v45 }
  0x36   :  { %709 = vmatpush1.bf16.msra.mxu0 %v2490_v46  ;;  %750 = vmatpush1.bf16.msra.mxu1 %v2495_v47 }
  0x37   :  { %710 = vmatprep.subr.bf16.mxu0 %v2502_v48  ;;  %751 = vmatprep.subr.bf16.mxu1 %v2509_v49 }
  0x38   :  { %373 = vmatprep.mubr.bf16.mxu0 %v3263_v3  ;;  %446 = vmatprep.mubr.bf16.mxu1 %v3263_v3 }
  0x3a   :  { %711 = vmatpush1.bf16.msra.mxu0 %v2514_v50  ;;  %752 = vmatpush1.bf16.msra.mxu1 %v2519_v51 }
  0x3b   :  { %712 = vmatprep.subr.bf16.mxu0 %v2526_v52  ;;  %753 = vmatprep.subr.bf16.mxu1 %v2533_v53 }
  0x3d   :  { %374 = vmatmul.mubr.bf16.gmra.mrb[8].mxu0 %v2062_v54  ;;  %447 = vmatmul.mubr.bf16.gmra.mrb[8].mxu1 %v2062_v54 }
  0x3e   :  { %713 = vmatpush1.bf16.msra.mxu0 %v2548_v56  ;;  %754 = vmatpush1.bf16.msra.mxu1 %v2553_v57 }
  0x3f   :  { %714 = vmatprep.subr.bf16.mxu0 %v2561_v58  ;;  %755 = vmatprep.subr.bf16.mxu1 %v2566_v59 }
  0x40   :  { %383 = vmatprep.mubr.bf16.mxu0 %v3263_v3  ;;  %456 = vmatprep.mubr.bf16.mxu1 %v3263_v3 }
  0x42   :  { %715 = vmatpush1.bf16.msra.mxu0 %v2574_v61  ;;  %756 = vmatpush1.bf16.msra.mxu1 %v2579_v62 }
  0x43   :  { %716 = vmatprep.subr.bf16.mxu0 %v2586_v63  ;;  %757 = vmatprep.subr.bf16.mxu1 %v2591_v1 }
  0x45   :  { %384 = vmatmul.mubr.bf16.gmra.mrb[12].mxu0 %v2075_v2  ;;  %457 = vmatmul.mubr.bf16.gmra.mrb[12].mxu1 %v2075_v2 }
  0x46   :  { %717 = vmatpush1.bf16.msra.mxu0 %v2601_v4  ;;  %758 = vmatpush1.bf16.msra.mxu1 %v2606_v5 }
  0x47   :  { %718 = vmatprep.subr.bf16.mxu0 %v2613_v6  ;;  %759 = vmatprep.subr.bf16.mxu1 %v2618_v7 }
  0x48   :  { %736 = vmatprep.mubr.bf16.mxu0 %v3263_v3  ;;  %777 = vmatprep.mubr.bf16.mxu1 %v3263_v3 }
  0x4a   :  { %719 = vmatpush1.bf16.msra.mxu0 %v2625_v8  ;;  %760 = vmatpush1.bf16.msra.mxu1 %v2630_v9 }
  0x4b   :  { %830 = vmatprep.subr.bf16.mxu0 %v2430_v34  ;;  %871 = vmatprep.subr.bf16.mxu1 %v2435_v35 }
  0x4d   :  { %737 = vmatmul.mubr.bf16.vlgmr.msra.gmra.mrb[16].mxu0 %v511_v11  ;;  %778 = vmatmul.mubr.bf16.vlgmr.msra.gmra.mrb[16].mxu1 %v511_v11 }
  0x4e   :  { %831 = vmatpush1.bf16.msra.mxu0 %v2441_v37  ;;  %872 = vmatpush1.bf16.msra.mxu1 %v2446_v38 }
  0x4f   :  { %832 = vmatprep.subr.bf16.mxu0 %v2453_v39  ;;  %873 = vmatprep.subr.bf16.mxu1 %v2458_v40 }
  0x50   :  { %862 = vmatprep.mubr.bf16.mxu0 %v3263_v3  ;;  %903 = vmatprep.mubr.bf16.mxu1 %v3263_v3 }
  0x52   :  { %833 = vmatpush1.bf16.msra.mxu0 %v2463_v41  ;;  %874 = vmatpush1.bf16.msra.mxu1 %v2470_v42 }
  0x53   :  { %834 = vmatprep.subr.bf16.mxu0 %v2477_v43  ;;  %875 = vmatprep.subr.bf16.mxu1 %v2482_v44 }
  0x56   :  { %835 = vmatpush1.bf16.msra.mxu0 %v2490_v46  ;;  %876 = vmatpush1.bf16.msra.mxu1 %v2495_v47 }
  0x57   :  { %836 = vmatprep.subr.bf16.mxu0 %v2502_v48  ;;  %877 = vmatprep.subr.bf16.mxu1 %v2509_v49 }
  0x5a   :  { %837 = vmatpush1.bf16.msra.mxu0 %v2514_v50  ;;  %878 = vmatpush1.bf16.msra.mxu1 %v2519_v51 }
  0x5b   :  { %838 = vmatprep.subr.bf16.mxu0 %v2526_v52  ;;  %879 = vmatprep.subr.bf16.mxu1 %v2533_v53 }
  0x5e   :  { %839 = vmatpush1.bf16.msra.mxu0 %v2548_v56  ;;  %880 = vmatpush1.bf16.msra.mxu1 %v2553_v57 }
  0x5f   :  { %840 = vmatprep.subr.bf16.mxu0 %v2561_v58  ;;  %881 = vmatprep.subr.bf16.mxu1 %v2566_v59 }
  0x62   :  { %841 = vmatpush1.bf16.msra.mxu0 %v2574_v61  ;;  %882 = vmatpush1.bf16.msra.mxu1 %v2579_v62 }
  0x63   :  { %842 = vmatprep.subr.bf16.mxu0 %v2586_v63  ;;  %883 = vmatprep.subr.bf16.mxu1 %v2591_v1 }
  0x66   :  { %843 = vmatpush1.bf16.msra.mxu0 %v2601_v4  ;;  %884 = vmatpush1.bf16.msra.mxu1 %v2606_v5 }
  0x67   :  { %844 = vmatprep.subr.bf16.mxu0 %v2613_v6  ;;  %885 = vmatprep.subr.bf16.mxu1 %v2618_v7 }
  0x6a   :  { %845 = vmatpush1.bf16.msra.mxu0 %v2625_v8  ;;  %886 = vmatpush1.bf16.msra.mxu1 %v2630_v9 }
  0x6b   :  { %957 = vmatprep.subr.bf16.mxu0 %v2430_v34  ;;  %998 = vmatprep.subr.bf16.mxu1 %v2435_v35 }
 0x100   :  { %v2681_v21 = vpop.f32.mrb[0].mxu0  ;;  %v2683_v22 = vpop.f32.mrb[0].mxu1 }
 0x101   :  { %v357_v25 = vpop.f32.mrb[1].mxu0  ;;  %v430_v26 = vpop.f32.mrb[1].mxu1 }
 0x102   :  { %v359_v28 = vpop.f32.mrb[2].mxu0  ;;  %v432_v29 = vpop.f32.mrb[2].mxu1 }
 0x103   :  { %v2687_v30 = vadd.f32 %v359_v28, %v120_v24  ;;  %v361_v31 = vpop.f32.mrb[3].mxu0  ;;  %v2690_v32 = vadd.f32 %v432_v29, %v2679_v20  ;;  %v434_v33 = vpop.f32.mrb[3].mxu1 }
 0x104   :  { %v2692_v36 = vadd.f32 %v361_v31, %v124_v27  ;;  %v2695_v45 = vadd.f32 %v434_v33, %v2685_v23 }
 0x108   :  { %v365_v54 = vpop.f32.mrb[4].mxu0  ;;  %v438_v60 = vpop.f32.mrb[4].mxu1 }
 0x109   :  { %v2697_v2 = vadd.f32 %v365_v54, %v120_v24  ;;  %v367_v10 = vpop.f32.mrb[5].mxu0  ;;  %v2700_v11 = vadd.f32 %v438_v60, %v2679_v20  ;;  %v440_v12 = vpop.f32.mrb[5].mxu1 }
 0x10a   :  { %v2702_v13 = vadd.f32 %v367_v10, %v124_v27  ;;  %v369_v14 = vpop.f32.mrb[6].mxu0  ;;  %v2705_v15 = vadd.f32 %v440_v12, %v2685_v23  ;;  %v442_v16 = vpop.f32.mrb[6].mxu1 }
 0x10b   :  { %v2707_v17 = vadd.f32 %v369_v14, %v120_v24  ;;  %v371_v18 = vpop.f32.mrb[7].mxu0  ;;  %v2710_v19 = vadd.f32 %v442_v16, %v2679_v20  ;;  %v444_v28 = vpop.f32.mrb[7].mxu1 }
 0x10c   :  { %3265 = vst [vmem:[#allocation9_spill] sm:$0xff] %v2702_v13  ;;  %3266 = vst [vmem:[#allocation10_spill] sm:$0xff] %v2705_v15  ;;  %v2712_v29 = vadd.f32 %v371_v18, %v124_v27  ;;  %v2715_v31 = vadd.f32 %v444_v28, %v2685_v23 }
 0x10d   :  { %3267 = vst [vmem:[#allocation11_spill] sm:$0xff] %v2707_v17  ;;  %3268 = vst [vmem:[#allocation12_spill] sm:$0xff] %v2710_v19 }
 0x10e   :  { %3269 = vst [vmem:[#allocation13_spill] sm:$0xff] %v2712_v29  ;;  %3270 = vst [vmem:[#allocation14_spill] sm:$0xff] %v2715_v31 }
 0x110   :  { %v375_v33 = vpop.f32.mrb[8].mxu0  ;;  %v448_v54 = vpop.f32.mrb[8].mxu1 }
 0x111   :  { %v2717_v60 = vadd.f32 %v375_v33, %v120_v24  ;;  %v377_v10 = vpop.f32.mrb[9].mxu0  ;;  %v2720_v12 = vadd.f32 %v448_v54, %v2679_v20  ;;  %v450_v14 = vpop.f32.mrb[9].mxu1 }
 0x112   :  { %v2722_v0 = vadd.f32 %v377_v10, %v124_v27  ;;  %v379_v3 = vpop.f32.mrb[10].mxu0  ;;  %v2725_v16 = vadd.f32 %v450_v14, %v2685_v23  ;;  %v452_v18 = vpop.f32.mrb[10].mxu1 }
 0x113   :  { %3271 = vst [vmem:[#allocation15_spill] sm:$0xff] %v2717_v60  ;;  %3272 = vst [vmem:[#allocation16_spill] sm:$0xff] %v2720_v12  ;;  %v2727_v29 = vadd.f32 %v379_v3, %v120_v24  ;;  %v381_v28 = vpop.f32.mrb[11].mxu0  ;;  %v2730_v31 = vadd.f32 %v452_v18, %v2679_v20  ;;  %v454_v33 = vpop.f32.mrb[11].mxu1 }
 0x114   :  { %3273 = vst [vmem:[#allocation17_spill] sm:$0xff] %v2722_v0  ;;  %3274 = vst [vmem:[#allocation18_spill] sm:$0xff] %v2725_v16  ;;  %v2732_v60 = vadd.f32 %v381_v28, %v124_v27  ;;  %v2735_v54 = vadd.f32 %v454_v33, %v2685_v23 }
 0x115   :  { %3275 = vst [vmem:[#allocation19_spill] sm:$0xff] %v2727_v29  ;;  %3276 = vst [vmem:[#allocation20_spill] sm:$0xff] %v2730_v31 }
 0x116   :  { %3277 = vst [vmem:[#allocation21_spill] sm:$0xff] %v2732_v60  ;;  %3278 = vst [vmem:[#allocation22_spill] sm:$0xff] %v2735_v54 }
 0x118   :  { %v385_v12 = vpop.f32.mrb[12].mxu0  ;;  %v458_v10 = vpop.f32.mrb[12].mxu1 }
 0x119   :  { %v2737_v0 = vadd.f32 %v385_v12, %v120_v24  ;;  %v387_v19 = vpop.f32.mrb[13].mxu0  ;;  %v2740_v14 = vadd.f32 %v458_v10, %v2679_v20  ;;  %v460_v3 = vpop.f32.mrb[13].mxu1 }
 0x11a   :  { %v2742_v29 = vadd.f32 %v387_v19, %v124_v27  ;;  %v389_v16 = vpop.f32.mrb[14].mxu0  ;;  %v2745_v18 = vadd.f32 %v460_v3, %v2685_v23  ;;  %v462_v28 = vpop.f32.mrb[14].mxu1  ;;  %v356_v19 = vadd.f32 %v2681_v21, %v120_v24  ;;  %v358_v3 = vadd.f32 %v357_v25, %v124_v27 }
 0x11b   :  { %3279 = vst [vmem:[#allocation23_spill] sm:$0xff] %v2737_v0  ;;  %3280 = vst [vmem:[#allocation24_spill] sm:$0xff] %v2740_v14  ;;  %v2747_v60 = vadd.f32 %v389_v16, %v120_v24  ;;  %v391_v33 = vpop.f32.mrb[15].mxu0  ;;  %v2750_v54 = vadd.f32 %v462_v28, %v2679_v20  ;;  %v464_v12 = vpop.f32.mrb[15].mxu1 }
 0x11c   :  { %3281 = vst [vmem:[#allocation25_spill] sm:$0xff] %v2742_v29  ;;  %3282 = vst [vmem:[#allocation26_spill] sm:$0xff] %v2745_v18  ;;  %v2752_v0 = vadd.f32 %v391_v33, %v124_v27  ;;  %v2755_v10 = vadd.f32 %v464_v12, %v2685_v23  ;;  %v429_v29 = vadd.f32 %v2683_v22, %v2679_v20 }
 0x11d   :  { %3283 = vst [vmem:[#allocation27_spill] sm:$0xff] %v2747_v60  ;;  %3284 = vst [vmem:[#allocation28_spill] sm:$0xff] %v2750_v54  ;;  %v431_v18 = vadd.f32 %v430_v26, %v2685_v23 }
 0x11e   :  { %3285 = vst [vmem:[#allocation29_spill] sm:$0xff] %v2752_v0  ;;  %3286 = vst [vmem:[#allocation30_spill] sm:$0xff] %v2755_v10 }
 0x120   :  { %v738_v16 = vpop.f32.mrb[16].mxu0  ;;  %v779_v60 = vpop.f32.mrb[16].mxu1 }
 0x121   :  { %v786_v14 = vadd.f32 %v738_v16, %v356_v19  ;;  %v788_v31 = vadd.f32 %v779_v60, %v429_v29  ;;  %v740_v28 = vpop.f32.mrb[17].mxu0  ;;  %v781_v54 = vpop.f32.mrb[17].mxu1  ;;  %v502_v29 = vld [vmem:[#allocation3] sm:$0xff]  ;;  %v3287_v19 = vmov 0  }
 0x122   :  { %v787_v17 = vadd.f32 %v740_v28, %v358_v3  ;;  %v789_v33 = vadd.f32 %v781_v54, %v431_v18  ;;  %v742_v0 = vpop.f32.mrb[18].mxu0  ;;  %v783_v15 = vpop.f32.mrb[18].mxu1  ;;  %v1070_v3 = vsel %vm1069_vm2, 1, %v3287_v19 }
 0x123   :  { %v1921_v12 = vmul.f32 -1.442695, %v786_v14  ;;  %v743_v10 = vpop.f32.mrb[19].mxu0  ;;  %v784_v13 = vpop.f32.mrb[19].mxu1  ;;  %1072 = vperm.xlu1 %1987, %v1070_v3  }
 0x124   :  { %v1922_v21 = vmul.f32 -1.442695, %v787_v17  ;;  %v1923_v20 = vmul.f32 -1.442695, %v789_v33 }
 0x125   :  { %2088 = vpow2.f32 %v1921_v12 }
 0x126   :  { %2090 = vpow2.f32 %v1922_v21 }
 0x127   :  { %2092 = vpow2.f32 %v1923_v20 }
 0x128   :  { %2094 = vtanh.f32 %v788_v31 }
 0x12f   :  { %v2089_v22 = vpop.eup %2088 }
 0x130   :  { %v2091_v24 = vpop.eup %2090  ;;  %v793_v23 = vadd.f32 1.0, %v2089_v22 }
 0x131   :  { %v799_v25 = vadd.f32 1.0, %v2091_v24  ;;  %v2093_v26 = vpop.eup %2092 }
 0x132   :  { %2096 = vrcp.f32 %v793_v23  ;;  %v2095_v27 = vpop.eup %2094  ;;  %v806_v54 = vadd.f32 1.0, %v2093_v26 }
 0x133   :  { %2098 = vrcp.f32 %v799_v25 }
 0x134   :  { %2100 = vrcp.f32 %v806_v54 }
 0x13c   :  { %v2097_v0 = vpop.eup %2096 }
 0x13d   :  { %v2099_v15 = vpop.eup %2098  ;;  %v810_v60 = vmul.f32 %v2097_v0, %v2095_v27 }
 0x13e   :  { %v809_v13 = vmul.f32 %v2099_v15, %v502_v29  ;;  %v2101_v14 = vpop.eup %2100 }
 0x140   :  { %v2761_v17 = vadd.f32 %v810_v60, %v809_v13 }
 0x142   :  { %2102 = vtanh.f32 %v2761_v17 }
 0x14c   :  { %v2103_v18 = vpop.eup %2102 }
 0x14d   :  { %v2764_v10 = vmul.f32 %v2103_v18, %v2101_v14 }
 0x14f   :  { %v829_v31 = vpack.c.bf16 %v2764_v10, %v2764_v10 }
 0x151   :  { %863 = vmatmul.mubr.bf16.vlgmr.msra.gmra.mrb[20].mxu0 %v829_v31  ;;  %904 = vmatmul.mubr.bf16.vlgmr.msra.gmra.mrb[20].mxu1 %v829_v31 }
 0x152   :  { %958 = vmatpush1.bf16.msra.mxu0 %v2441_v37  ;;  %999 = vmatpush1.bf16.msra.mxu1 %v2446_v38 }
 0x153   :  { %959 = vmatprep.subr.bf16.mxu0 %v2453_v39  ;;  %1000 = vmatprep.subr.bf16.mxu1 %v2458_v40 }
 0x154   :  { %989 = vmatprep.mubr.bf16.mxu0 %v3287_v19  ;;  %1030 = vmatprep.mubr.bf16.mxu1 %v3287_v19 }
 0x156   :  { %960 = vmatpush1.bf16.msra.mxu0 %v2463_v41  ;;  %1001 = vmatpush1.bf16.msra.mxu1 %v2470_v42 }
 0x157   :  { %961 = vmatprep.subr.bf16.mxu0 %v2477_v43  ;;  %1002 = vmatprep.subr.bf16.mxu1 %v2482_v44 }
 0x15a   :  { %962 = vmatpush1.bf16.msra.mxu0 %v2490_v46  ;;  %1003 = vmatpush1.bf16.msra.mxu1 %v2495_v47 }
 0x15b   :  { %963 = vmatprep.subr.bf16.mxu0 %v2502_v48  ;;  %1004 = vmatprep.subr.bf16.mxu1 %v2509_v49 }
 0x15e   :  { %964 = vmatpush1.bf16.msra.mxu0 %v2514_v50  ;;  %1005 = vmatpush1.bf16.msra.mxu1 %v2519_v51 }
 0x15f   :  { %965 = vmatprep.subr.bf16.mxu0 %v2526_v52  ;;  %1006 = vmatprep.subr.bf16.mxu1 %v2533_v53 }
 0x162   :  { %966 = vmatpush1.bf16.msra.mxu0 %v2548_v56  ;;  %1007 = vmatpush1.bf16.msra.mxu1 %v2553_v57 }
 0x163   :  { %967 = vmatprep.subr.bf16.mxu0 %v2561_v58  ;;  %1008 = vmatprep.subr.bf16.mxu1 %v2566_v59 }
 0x166   :  { %968 = vmatpush1.bf16.msra.mxu0 %v2574_v61  ;;  %1009 = vmatpush1.bf16.msra.mxu1 %v2579_v62 }
 0x167   :  { %969 = vmatprep.subr.bf16.mxu0 %v2586_v63  ;;  %1010 = vmatprep.subr.bf16.mxu1 %v2591_v1 }
 0x16a   :  { %970 = vmatpush1.bf16.msra.mxu0 %v2601_v4  ;;  %1011 = vmatpush1.bf16.msra.mxu1 %v2606_v5 }
 0x16b   :  { %971 = vmatprep.subr.bf16.mxu0 %v2613_v6  ;;  %1012 = vmatprep.subr.bf16.mxu1 %v2618_v7 }
 0x16e   :  { %972 = vmatpush1.bf16.msra.mxu0 %v2625_v8  ;;  %1013 = vmatpush1.bf16.msra.mxu1 %v2630_v9 }
 0x16f   :  { %1084 = vmatprep.subr.bf16.mxu0 %v2430_v34  ;;  %1125 = vmatprep.subr.bf16.mxu1 %v2435_v35 }
 0x224   :  { %v864_v16 = vpop.f32.mrb[20].mxu0  ;;  %v905_v28 = vpop.f32.mrb[20].mxu1 }
 0x225   :  { %v912_v33 = vadd.f32 %v864_v16, %v2687_v30  ;;  %v914_v12 = vadd.f32 %v905_v28, %v2690_v32  ;;  %v866_v21 = vpop.f32.mrb[21].mxu0  ;;  %v907_v20 = vpop.f32.mrb[21].mxu1 }
 0x226   :  { %v913_v22 = vadd.f32 %v866_v21, %v2692_v36  ;;  %v915_v24 = vadd.f32 %v907_v20, %v2695_v45  ;;  %v868_v23 = vpop.f32.mrb[22].mxu0  ;;  %v909_v25 = vpop.f32.mrb[22].mxu1 }
 0x227   :  { %v1924_v26 = vmul.f32 -1.442695, %v912_v33  ;;  %v869_v27 = vpop.f32.mrb[23].mxu0  ;;  %v910_v29 = vpop.f32.mrb[23].mxu1 }
 0x228   :  { %v1925_v0 = vmul.f32 -1.442695, %v913_v22  ;;  %v1926_v15 = vmul.f32 -1.442695, %v915_v24  ;;  %v819_v28 = vpop.permute.xlu0 %818 }
 0x229   :  { %2104 = vpow2.f32 %v1924_v26  ;;  %vm820_vm3 = vcmp.eq.s32.totalorder %v819_v28, 1 }
 0x22a   :  { %2106 = vpow2.f32 %v1925_v0 }
 0x22b   :  { %2108 = vpow2.f32 %v1926_v15 }
 0x22c   :  { %2110 = vtanh.f32 %v914_v12  ;;  %v946_v33 = vpop.permute.xlu0 %945  ;;  %v503_v12 = vld [vmem:[#allocation4] sm:$0xff] }
 0x22d   :  { %vm947_vm4 = vcmp.eq.s32.totalorder %v946_v33, 1  ;;  %v821_v24 = vsel %vm820_vm3, %v2764_v10, %v503_v12 }
 0x233   :  { %v2105_v60 = vpop.eup %2104 }
 0x234   :  { %v2107_v54 = vpop.eup %2106  ;;  %v919_v30 = vadd.f32 1.0, %v2105_v60  ;;  %v3288_v60 = vld [vmem:[#allocation9_spill] sm:$0xff] }
 0x235   :  { %v925_v32 = vadd.f32 1.0, %v2107_v54  ;;  %v2109_v36 = vpop.eup %2108 }
 0x236   :  { %2112 = vrcp.f32 %v919_v30  ;;  %v2111_v13 = vpop.eup %2110  ;;  %v932_v31 = vadd.f32 1.0, %v2109_v36  ;;  %v3289_v30 = vld [vmem:[#allocation10_spill] sm:$0xff] }
 0x237   :  { %2114 = vrcp.f32 %v925_v32 }
 0x238   :  { %2116 = vrcp.f32 %v932_v31 }
 0x240   :  { %v2113_v45 = vpop.eup %2112 }
 0x241   :  { %v2115_v14 = vpop.eup %2114  ;;  %v936_v18 = vmul.f32 %v2113_v45, %v2111_v13 }
 0x242   :  { %v935_v3 = vmul.f32 %v2115_v14, %v2761_v17  ;;  %v2117_v21 = vpop.eup %2116  ;;  %v1197_v17 = vsel %vm1196_vm5, 1, %v3287_v19 }
 0x243   :  { %1199 = vperm.xlu1 %1987, %v1197_v17  }
 0x244   :  { %v2809_v16 = vadd.f32 %v936_v18, %v935_v3 }
 0x246   :  { %2118 = vtanh.f32 %v2809_v16 }
 0x250   :  { %v2119_v20 = vpop.eup %2118 }
 0x251   :  { %v939_v22 = vmul.f32 %v2119_v20, %v2117_v21 }
 0x253   :  { %v2813_v23 = vsel %vm947_vm4, %v939_v22, %v821_v24  ;;  %v956_v25 = vpack.c.bf16 %v939_v22, %v939_v22 }
 0x255   :  { %990 = vmatmul.mubr.bf16.vlgmr.msra.gmra.mrb[24].mxu0 %v956_v25  ;;  %1031 = vmatmul.mubr.bf16.vlgmr.msra.gmra.mrb[24].mxu1 %v956_v25 }
 0x256   :  { %1085 = vmatpush1.bf16.msra.mxu0 %v2441_v37  ;;  %1126 = vmatpush1.bf16.msra.mxu1 %v2446_v38 }
 0x257   :  { %1086 = vmatprep.subr.bf16.mxu0 %v2453_v39  ;;  %1127 = vmatprep.subr.bf16.mxu1 %v2458_v40 }
 0x258   :  { %1116 = vmatprep.mubr.bf16.mxu0 %v3287_v19  ;;  %1157 = vmatprep.mubr.bf16.mxu1 %v3287_v19 }
 0x25a   :  { %1087 = vmatpush1.bf16.msra.mxu0 %v2463_v41  ;;  %1128 = vmatpush1.bf16.msra.mxu1 %v2470_v42 }
 0x25b   :  { %1088 = vmatprep.subr.bf16.mxu0 %v2477_v43  ;;  %1129 = vmatprep.subr.bf16.mxu1 %v2482_v44 }
 0x25e   :  { %1089 = vmatpush1.bf16.msra.mxu0 %v2490_v46  ;;  %1130 = vmatpush1.bf16.msra.mxu1 %v2495_v47 }
 0x25f   :  { %1090 = vmatprep.subr.bf16.mxu0 %v2502_v48  ;;  %1131 = vmatprep.subr.bf16.mxu1 %v2509_v49 }
 0x262   :  { %1091 = vmatpush1.bf16.msra.mxu0 %v2514_v50  ;;  %1132 = vmatpush1.bf16.msra.mxu1 %v2519_v51 }
 0x263   :  { %1092 = vmatprep.subr.bf16.mxu0 %v2526_v52  ;;  %1133 = vmatprep.subr.bf16.mxu1 %v2533_v53 }
 0x266   :  { %1093 = vmatpush1.bf16.msra.mxu0 %v2548_v56  ;;  %1134 = vmatpush1.bf16.msra.mxu1 %v2553_v57 }
 0x267   :  { %1094 = vmatprep.subr.bf16.mxu0 %v2561_v58  ;;  %1135 = vmatprep.subr.bf16.mxu1 %v2566_v59 }
 0x26a   :  { %1095 = vmatpush1.bf16.msra.mxu0 %v2574_v61  ;;  %1136 = vmatpush1.bf16.msra.mxu1 %v2579_v62 }
 0x26b   :  { %1096 = vmatprep.subr.bf16.mxu0 %v2586_v63  ;;  %1137 = vmatprep.subr.bf16.mxu1 %v2591_v1 }
 0x26e   :  { %1097 = vmatpush1.bf16.msra.mxu0 %v2601_v4  ;;  %1138 = vmatpush1.bf16.msra.mxu1 %v2606_v5 }
 0x26f   :  { %1098 = vmatprep.subr.bf16.mxu0 %v2613_v6  ;;  %1139 = vmatprep.subr.bf16.mxu1 %v2618_v7 }
 0x272   :  { %1099 = vmatpush1.bf16.msra.mxu0 %v2625_v8  ;;  %1140 = vmatpush1.bf16.msra.mxu1 %v2630_v9 }
 0x273   :  { %1211 = vmatprep.subr.bf16.mxu0 %v2430_v34  ;;  %1252 = vmatprep.subr.bf16.mxu1 %v2435_v35 }
 0x328   :  { %v991_v10 = vpop.f32.mrb[24].mxu0  ;;  %v1032_v26 = vpop.f32.mrb[24].mxu1 }
 0x329   :  { %v1039_v27 = vadd.f32 %v991_v10, %v2697_v2  ;;  %v1041_v29 = vadd.f32 %v1032_v26, %v2700_v11  ;;  %v993_v0 = vpop.f32.mrb[25].mxu0  ;;  %v1034_v15 = vpop.f32.mrb[25].mxu1 }
 0x32a   :  { %v1040_v54 = vadd.f32 %v993_v0, %v3288_v60  ;;  %v1042_v32 = vadd.f32 %v1034_v15, %v3289_v30  ;;  %v995_v36 = vpop.f32.mrb[26].mxu0  ;;  %v1036_v13 = vpop.f32.mrb[26].mxu1  ;;  %v3291_v30 = vld [vmem:[#allocation12_spill] sm:$0xff] }
 0x32b   :  { %v1927_v45 = vmul.f32 -1.442695, %v1039_v27  ;;  %v996_v14 = vpop.f32.mrb[27].mxu0  ;;  %v1037_v18 = vpop.f32.mrb[27].mxu1 }
 0x32c   :  { %v1928_v31 = vmul.f32 -1.442695, %v1040_v54  ;;  %v1929_v3 = vmul.f32 -1.442695, %v1042_v32  ;;  %v1073_v26 = vpop.permute.xlu1 %1072  ;;  %v3293_v18 = vld [vmem:[#allocation14_spill] sm:$0xff] }
 0x32d   :  { %2120 = vpow2.f32 %v1927_v45  ;;  %vm1074_vm6 = vcmp.eq.s32.totalorder %v1073_v26, 1  ;;  %v3292_v45 = vld [vmem:[#allocation13_spill] sm:$0xff] }
 0x32e   :  { %2122 = vpow2.f32 %v1928_v31 }
 0x32f   :  { %2124 = vpow2.f32 %v1929_v3 }
 0x330   :  { %2126 = vtanh.f32 %v1041_v29 }
 0x337   :  { %v2121_v28 = vpop.eup %2120 }
 0x338   :  { %v2123_v33 = vpop.eup %2122  ;;  %v1046_v2 = vadd.f32 1.0, %v2121_v28 }
 0x339   :  { %v1052_v11 = vadd.f32 1.0, %v2123_v33  ;;  %v2125_v21 = vpop.eup %2124 }
 0x33a   :  { %2128 = vrcp.f32 %v1046_v2  ;;  %v2127_v12 = vpop.eup %2126  ;;  %v1059_v25 = vadd.f32 1.0, %v2125_v21 }
 0x33b   :  { %2130 = vrcp.f32 %v1052_v11 }
 0x33c   :  { %2132 = vrcp.f32 %v1059_v25 }
 0x344   :  { %v2129_v20 = vpop.eup %2128 }
 0x345   :  { %v2131_v22 = vpop.eup %2130  ;;  %v1063_v24 = vmul.f32 %v2129_v20, %v2127_v12 }
 0x346   :  { %v1062_v17 = vmul.f32 %v2131_v22, %v2809_v16  ;;  %v2133_v27 = vpop.eup %2132 }
 0x348   :  { %v2856_v10 = vadd.f32 %v1063_v24, %v1062_v17 }
 0x34a   :  { %2134 = vtanh.f32 %v2856_v10 }
 0x354   :  { %v2135_v0 = vpop.eup %2134 }
 0x355   :  { %v1066_v29 = vmul.f32 %v2135_v0, %v2133_v27 }
 0x357   :  { %v2860_v15 = vsel %vm1074_vm6, %v1066_v29, %v2813_v23  ;;  %v1083_v60 = vpack.c.bf16 %v1066_v29, %v1066_v29  ;;  %v3290_v23 = vld [vmem:[#allocation11_spill] sm:$0xff] }
 0x359   :  { %1117 = vmatmul.mubr.bf16.vlgmr.msra.gmra.mrb[28].mxu0 %v1083_v60  ;;  %1158 = vmatmul.mubr.bf16.vlgmr.msra.gmra.mrb[28].mxu1 %v1083_v60 }
 0x35a   :  { %1212 = vmatpush1.bf16.msra.mxu0 %v2441_v37  ;;  %1253 = vmatpush1.bf16.msra.mxu1 %v2446_v38  ;;  %v1324_v37 = vsel %vm1323_vm7, 1, %v3287_v19 }
 0x35b   :  { %1213 = vmatprep.subr.bf16.mxu0 %v2453_v39  ;;  %1254 = vmatprep.subr.bf16.mxu1 %v2458_v40 }
 0x35c   :  { %1243 = vmatprep.mubr.bf16.mxu0 %v3287_v19  ;;  %1284 = vmatprep.mubr.bf16.mxu1 %v3287_v19 }
 0x35d   :  { %1326 = vperm.xlu0 %1986, %v1324_v37   ;;  %v1200_v37 = vpop.permute.xlu1 %1199 }
 0x35e   :  { %1214 = vmatpush1.bf16.msra.mxu0 %v2463_v41  ;;  %1255 = vmatpush1.bf16.msra.mxu1 %v2470_v42  ;;  %vm1201_vm8 = vcmp.eq.s32.totalorder %v1200_v37, 1  ;;  %v3073_v37 = vld [vmem:[%s3255_s5 + $0x88] ss:$16 sps:$4 sm:$0xff]  }
 0x35f   :  { %1215 = vmatprep.subr.bf16.mxu0 %v2477_v43  ;;  %1256 = vmatprep.subr.bf16.mxu1 %v2482_v44 }
 0x362   :  { %1216 = vmatpush1.bf16.msra.mxu0 %v2490_v46  ;;  %1257 = vmatpush1.bf16.msra.mxu1 %v2495_v47 }
 0x363   :  { %1217 = vmatprep.subr.bf16.mxu0 %v2502_v48  ;;  %1258 = vmatprep.subr.bf16.mxu1 %v2509_v49 }
 0x366   :  { %1218 = vmatpush1.bf16.msra.mxu0 %v2514_v50  ;;  %1259 = vmatpush1.bf16.msra.mxu1 %v2519_v51 }
 0x367   :  { %1219 = vmatprep.subr.bf16.mxu0 %v2526_v52  ;;  %1260 = vmatprep.subr.bf16.mxu1 %v2533_v53 }
 0x36a   :  { %1220 = vmatpush1.bf16.msra.mxu0 %v2548_v56  ;;  %1261 = vmatpush1.bf16.msra.mxu1 %v2553_v57 }
 0x36b   :  { %1221 = vmatprep.subr.bf16.mxu0 %v2561_v58  ;;  %1262 = vmatprep.subr.bf16.mxu1 %v2566_v59 }
 0x36e   :  { %1222 = vmatpush1.bf16.msra.mxu0 %v2574_v61  ;;  %1263 = vmatpush1.bf16.msra.mxu1 %v2579_v62 }
 0x36f   :  { %1223 = vmatprep.subr.bf16.mxu0 %v2586_v63  ;;  %1264 = vmatprep.subr.bf16.mxu1 %v2591_v1 }
 0x372   :  { %1224 = vmatpush1.bf16.msra.mxu0 %v2601_v4  ;;  %1265 = vmatpush1.bf16.msra.mxu1 %v2606_v5 }
 0x373   :  { %1225 = vmatprep.subr.bf16.mxu0 %v2613_v6  ;;  %1266 = vmatprep.subr.bf16.mxu1 %v2618_v7 }
 0x376   :  { %1226 = vmatpush1.bf16.msra.mxu0 %v2625_v8  ;;  %1267 = vmatpush1.bf16.msra.mxu1 %v2630_v9 }
 0x377   :  { %1338 = vmatprep.subr.bf16.mxu0 %v2430_v34  ;;  %1379 = vmatprep.subr.bf16.mxu1 %v2435_v35 }
 0x42c   :  { %v1118_v38 = vpop.f32.mrb[28].mxu0  ;;  %v1159_v16 = vpop.f32.mrb[28].mxu1 }
 0x42d   :  { %v1166_v54 = vadd.f32 %v1118_v38, %v3290_v23  ;;  %v1168_v32 = vadd.f32 %v1159_v16, %v3291_v30  ;;  %v1120_v36 = vpop.f32.mrb[29].mxu0  ;;  %v1161_v13 = vpop.f32.mrb[29].mxu1 }
 0x42e   :  { %v1167_v14 = vadd.f32 %v1120_v36, %v3292_v45  ;;  %v1169_v31 = vadd.f32 %v1161_v13, %v3293_v18  ;;  %v1122_v34 = vpop.f32.mrb[30].mxu0  ;;  %v1163_v3 = vpop.f32.mrb[30].mxu1 }
 0x42f   :  { %v1930_v35 = vmul.f32 -1.442695, %v1166_v54  ;;  %v1123_v28 = vpop.f32.mrb[31].mxu0  ;;  %v1164_v33 = vpop.f32.mrb[31].mxu1 }
 0x430   :  { %v1931_v2 = vmul.f32 -1.442695, %v1167_v14  ;;  %v1932_v11 = vmul.f32 -1.442695, %v1169_v31  ;;  %v1327_v18 = vpop.permute.xlu0 %1326  ;;  %v2981_v33 = vld [vmem:[%s3255_s5 + $0x24] ss:$16 sps:$4 sm:$0xff]  }
 0x431   :  { %2136 = vpow2.f32 %v1930_v35  ;;  %vm1328_vm10 = vcmp.eq.s32.totalorder %v1327_v18, 1 }
 0x432   :  { %2138 = vpow2.f32 %v1931_v2  ;;  %v2987_v2 = vld [vmem:[%s3255_s5 + $0x2c] ss:$16 sps:$4 sm:$0xff]  }
 0x433   :  { %2140 = vpow2.f32 %v1932_v11  ;;  %v2995_v11 = vld [vmem:[%s3255_s5 + $0x20] ss:$16 sps:$4 sm:$0xff]  }
 0x434   :  { %2142 = vtanh.f32 %v1168_v32  ;;  %v2918_v32 = vld [vmem:[%s3255_s5 + $0x8] ss:$16 sps:$4 sm:$0xff]  }
 0x43b   :  { %v2137_v21 = vpop.eup %2136 }
 0x43c   :  { %v2139_v12 = vpop.eup %2138  ;;  %v1173_v20 = vadd.f32 1.0, %v2137_v21  ;;  %v3001_v21 = vld [vmem:[%s3255_s5 + $0x28] ss:$16 sps:$4 sm:$0xff]  }
 0x43d   :  { %v1179_v22 = vadd.f32 1.0, %v2139_v12  ;;  %v2141_v24 = vpop.eup %2140  ;;  %v3007_v12 = vld [vmem:[%s3255_s5 + $0x44] ss:$16 sps:$4 sm:$0xff]  }
 0x43e   :  { %2144 = vrcp.f32 %v1173_v20  ;;  %v2143_v25 = vpop.eup %2142  ;;  %v1186_v0 = vadd.f32 1.0, %v2141_v24  ;;  %v3013_v20 = vld [vmem:[%s3255_s5 + $0x4c] ss:$16 sps:$4 sm:$0xff]   ;;  %v3025_v24 = vld [vmem:[%s3255_s5 + $0x48] ss:$16 sps:$4 sm:$0xff]  }
 0x43f   :  { %2146 = vrcp.f32 %v1179_v22  ;;  %v3019_v22 = vld [vmem:[%s3255_s5 + $0x40] ss:$16 sps:$4 sm:$0xff]  }
 0x440   :  { %2148 = vrcp.f32 %v1186_v0  ;;  %v3055_v0 = vld [vmem:[%s3255_s5 + $0x84] ss:$16 sps:$4 sm:$0xff]  }
 0x448   :  { %v2145_v17 = vpop.eup %2144 }
 0x449   :  { %v2147_v26 = vpop.eup %2146  ;;  %v1190_v27 = vmul.f32 %v2145_v17, %v2143_v25  ;;  %v3031_v25 = vld [vmem:[%s3255_s5 + $0x64] ss:$16 sps:$4 sm:$0xff]   ;;  %v3037_v17 = vld [vmem:[%s3255_s5 + $0x6c] ss:$16 sps:$4 sm:$0xff]  }
 0x44a   :  { %v1189_v29 = vmul.f32 %v2147_v26, %v2856_v10  ;;  %v2149_v38 = vpop.eup %2148  ;;  %v2912_v10 = vld [vmem:[%s3255_s5] ss:$16 sps:$4 sm:$0xff]  }
 0x44b   :  { %v3043_v26 = vld [vmem:[%s3255_s5 + $0x60] ss:$16 sps:$4 sm:$0xff]  }
 0x44c   :  { %v2903_v60 = vadd.f32 %v1190_v27, %v1189_v29  ;;  %v3049_v27 = vld [vmem:[%s3255_s5 + $0x68] ss:$16 sps:$4 sm:$0xff]   ;;  %v3061_v29 = vld [vmem:[%s3255_s5 + $0x8c] ss:$16 sps:$4 sm:$0xff]  }
 0x44e   :  { %2150 = vtanh.f32 %v2903_v60 }
 0x458   :  { %v2151_v16 = vpop.eup %2150 }
 0x459   :  { %v1193_v23 = vmul.f32 %v2151_v16, %v2149_v38  ;;  %v3079_v38 = vld [vmem:[%s3255_s5 + $0xa4] ss:$16 sps:$4 sm:$0xff]   ;;  %v3085_v16 = vld [vmem:[%s3255_s5 + $0xac] ss:$16 sps:$4 sm:$0xff]  }
 0x45b   :  { %v2907_v54 = vsel %vm1201_vm8, %v1193_v23, %v2860_v15  ;;  %v1210_v30 = vpack.c.bf16 %v1193_v23, %v1193_v23  ;;  %v3091_v23 = vld [vmem:[%s3255_s5 + $0xa0] ss:$16 sps:$4 sm:$0xff]  }
 0x45d   :  { %1244 = vmatmul.mubr.bf16.vlgmr.msra.gmra.mrb[32].mxu0 %v1210_v30  ;;  %1285 = vmatmul.mubr.bf16.vlgmr.msra.gmra.mrb[32].mxu1 %v1210_v30  ;;  %v3103_v30 = vld [vmem:[%s3255_s5 + $0xc4] ss:$16 sps:$4 sm:$0xff]  }
 0x45e   :  { %1339 = vmatpush1.bf16.msra.mxu0 %v2912_v10  ;;  %1380 = vmatpush1.bf16.msra.mxu1 %v2918_v32 }
 0x45f   :  { %1340 = vmatprep.subr.bf16.mxu0 %v2453_v39  ;;  %1381 = vmatprep.subr.bf16.mxu1 %v2458_v40  ;;  %v2954_v39 = vld [vmem:[%s3255_s5 + $0x4] ss:$16 sps:$4 sm:$0xff]   ;;  %v2960_v40 = vld [vmem:[%s3255_s5 + $0xc] ss:$16 sps:$4 sm:$0xff]  }
 0x460   :  { %1370 = vmatprep.mubr.bf16.mxu0 %v3287_v19  ;;  %1411 = vmatprep.mubr.bf16.mxu1 %v3287_v19 }
 0x462   :  { %1341 = vmatpush1.bf16.msra.mxu0 %v2463_v41  ;;  %1382 = vmatpush1.bf16.msra.mxu1 %v2470_v42  ;;  %v1451_v41 = vsel %vm1450_vm9, 1, %v3287_v19 }
 0x463   :  { %1342 = vmatprep.subr.bf16.mxu0 %v2477_v43  ;;  %1383 = vmatprep.subr.bf16.mxu1 %v2482_v44  ;;  %v3294_v44 = vld [vmem:[#allocation15_spill] sm:$0xff] }
 0x464   :  { %1453 = vperm.xlu1 %1987, %v1451_v41   ;;  %v3109_v41 = vld [vmem:[%s3255_s5 + $0xcc] ss:$16 sps:$4 sm:$0xff]  }
 0x466   :  { %1343 = vmatpush1.bf16.msra.mxu0 %v2490_v46  ;;  %1384 = vmatpush1.bf16.msra.mxu1 %v2495_v47  ;;  %v3295_v47 = vld [vmem:[#allocation16_spill] sm:$0xff] }
 0x467   :  { %1344 = vmatprep.subr.bf16.mxu0 %v2502_v48  ;;  %1385 = vmatprep.subr.bf16.mxu1 %v2509_v49 }
 0x46a   :  { %1345 = vmatpush1.bf16.msra.mxu0 %v2514_v50  ;;  %1386 = vmatpush1.bf16.msra.mxu1 %v2519_v51  ;;  %v3296_v51 = vld [vmem:[#allocation17_spill] sm:$0xff] }
 0x46b   :  { %1346 = vmatprep.subr.bf16.mxu0 %v2526_v52  ;;  %1387 = vmatprep.subr.bf16.mxu1 %v2533_v53  ;;  %v3297_v53 = vld [vmem:[#allocation18_spill] sm:$0xff] }
 0x46e   :  { %1347 = vmatpush1.bf16.msra.mxu0 %v2548_v56  ;;  %1388 = vmatpush1.bf16.msra.mxu1 %v2553_v57 }
 0x46f   :  { %1348 = vmatprep.subr.bf16.mxu0 %v2561_v58  ;;  %1389 = vmatprep.subr.bf16.mxu1 %v2566_v59 }
 0x472   :  { %1349 = vmatpush1.bf16.msra.mxu0 %v2574_v61  ;;  %1390 = vmatpush1.bf16.msra.mxu1 %v2579_v62 }
 0x473   :  { %1350 = vmatprep.subr.bf16.mxu0 %v2586_v63  ;;  %1391 = vmatprep.subr.bf16.mxu1 %v2591_v1 }
 0x476   :  { %1351 = vmatpush1.bf16.msra.mxu0 %v2601_v4  ;;  %1392 = vmatpush1.bf16.msra.mxu1 %v2606_v5 }
 0x477   :  { %1352 = vmatprep.subr.bf16.mxu0 %v2613_v6  ;;  %1393 = vmatprep.subr.bf16.mxu1 %v2618_v7 }
 0x47a   :  { %1353 = vmatpush1.bf16.msra.mxu0 %v2625_v8  ;;  %1394 = vmatpush1.bf16.msra.mxu1 %v2630_v9 }
 0x47b   :  { %1465 = vmatprep.subr.bf16.mxu0 %v2954_v39  ;;  %1506 = vmatprep.subr.bf16.mxu1 %v2960_v40 }
 0x530   :  { %v1245_v42 = vpop.f32.mrb[32].mxu0  ;;  %v1286_v43 = vpop.f32.mrb[32].mxu1 }
 0x531   :  { %v1293_v46 = vadd.f32 %v1245_v42, %v3294_v44  ;;  %v1295_v48 = vadd.f32 %v1286_v43, %v3295_v47  ;;  %v1247_v49 = vpop.f32.mrb[33].mxu0  ;;  %v1288_v50 = vpop.f32.mrb[33].mxu1  ;;  %v3115_v42 = vld [vmem:[%s3255_s5 + $0xc0] ss:$16 sps:$4 sm:$0xff]   ;;  %v3121_v43 = vld [vmem:[%s3255_s5 + $0xc8] ss:$16 sps:$4 sm:$0xff]  }
 0x532   :  { %v1294_v52 = vadd.f32 %v1247_v49, %v3296_v51  ;;  %v1296_v56 = vadd.f32 %v1288_v50, %v3297_v53  ;;  %v1249_v57 = vpop.f32.mrb[34].mxu0  ;;  %v1290_v58 = vpop.f32.mrb[34].mxu1  ;;  %v3127_v44 = vld [vmem:[%s3255_s5 + $0xe4] ss:$16 sps:$4 sm:$0xff]   ;;  %v3139_v47 = vld [vmem:[%s3255_s5 + $0xe0] ss:$16 sps:$4 sm:$0xff]  }
 0x533   :  { %v1933_v59 = vmul.f32 -1.442695, %v1293_v46  ;;  %v1250_v61 = vpop.f32.mrb[35].mxu0  ;;  %v1291_v55 = vpop.f32.mrb[35].mxu1  ;;  %v3133_v46 = vld [vmem:[%s3255_s5 + $0xec] ss:$16 sps:$4 sm:$0xff]  }
 0x534   :  { %v1934_v62 = vmul.f32 -1.442695, %v1294_v52  ;;  %v1935_v63 = vmul.f32 -1.442695, %v1296_v56  ;;  %v3153_v49 = vld [vmem:[%s3253_s2] sm:$0xff]  ;;  %v3298_v53 = vld [vmem:[#allocation19_spill] sm:$0xff] }
 0x535   :  { %2152 = vpow2.f32 %v1933_v59  ;;  %vm1577_vm11 = vcmp.eq.s32.totalorder %v3153_v49, 6  ;;  %v3299_v57 = vld [vmem:[#allocation20_spill] sm:$0xff]  ;;  %v3300_v61 = vld [vmem:[#allocation21_spill] sm:$0xff]  ;;  %v3301_v55 = vld [vmem:[#allocation22_spill] sm:$0xff]  ;;  %vm1704_vm13 = vcmp.eq.s32.totalorder %v3153_v49, 7 }
 0x536   :  { %2154 = vpow2.f32 %v1934_v62  ;;  %v1578_v50 = vsel %vm1577_vm11, 1, %v3287_v19 }
 0x537   :  { %2156 = vpow2.f32 %v1935_v63  ;;  %1580 = vperm.xlu0 %1986, %v1578_v50  }
 0x538   :  { %2158 = vtanh.f32 %v1295_v48  ;;  %v3145_v48 = vld [vmem:[%s3255_s5 + $0xe8] ss:$16 sps:$4 sm:$0xff]  }
 0x53f   :  { %v2153_v1 = vpop.eup %2152 }
 0x540   :  { %v2155_v4 = vpop.eup %2154  ;;  %v1300_v5 = vadd.f32 1.0, %v2153_v1 }
 0x541   :  { %v1306_v6 = vadd.f32 1.0, %v2155_v4  ;;  %v2157_v7 = vpop.eup %2156 }
 0x542   :  { %2160 = vrcp.f32 %v1300_v5  ;;  %v2159_v8 = vpop.eup %2158  ;;  %v1313_v13 = vadd.f32 1.0, %v2157_v7 }
 0x543   :  { %2162 = vrcp.f32 %v1306_v6 }
 0x544   :  { %2164 = vrcp.f32 %v1313_v13 }
 0x54c   :  { %v2161_v9 = vpop.eup %2160 }
 0x54d   :  { %v2163_v15 = vpop.eup %2162  ;;  %v1317_v36 = vmul.f32 %v2161_v9, %v2159_v8 }
 0x54e   :  { %v1316_v45 = vmul.f32 %v2163_v15, %v2903_v60  ;;  %v2165_v31 = vpop.eup %2164  ;;  %v3067_v60 = vld [vmem:[%s3255_s5 + $0x80] ss:$16 sps:$4 sm:$0xff]  }
 0x550   :  { %v2970_v14 = vadd.f32 %v1317_v36, %v1316_v45 }
 0x552   :  { %2166 = vtanh.f32 %v2970_v14 }
 0x55c   :  { %v2167_v34 = vpop.eup %2166 }
 0x55d   :  { %v1320_v3 = vmul.f32 %v2167_v34, %v2165_v31 }
 0x55f   :  { %v2974_v35 = vsel %vm1328_vm10, %v1320_v3, %v2907_v54  ;;  %v1337_v28 = vpack.c.bf16 %v1320_v3, %v1320_v3  ;;  %v3097_v54 = vld [vmem:[%s3255_s5 + $0xa8] ss:$16 sps:$4 sm:$0xff]  }
 0x561   :  { %1371 = vmatmul.mubr.bf16.vlgmr.msra.gmra.mrb[36].mxu0 %v1337_v28  ;;  %1412 = vmatmul.mubr.bf16.vlgmr.msra.gmra.mrb[36].mxu1 %v1337_v28 }
 0x562   :  { %1466 = vmatpush1.bf16.msra.mxu0 %v2912_v10  ;;  %1507 = vmatpush1.bf16.msra.mxu1 %v2918_v32 }
 0x563   :  { %1467 = vmatprep.subr.bf16.mxu0 %v2981_v33  ;;  %1508 = vmatprep.subr.bf16.mxu1 %v2987_v2 }
 0x564   :  { %1497 = vmatprep.mubr.bf16.mxu0 %v3287_v19  ;;  %1538 = vmatprep.mubr.bf16.mxu1 %v3287_v19 }
 0x566   :  { %1468 = vmatpush1.bf16.msra.mxu0 %v2995_v11  ;;  %1509 = vmatpush1.bf16.msra.mxu1 %v3001_v21 }
 0x567   :  { %1469 = vmatprep.subr.bf16.mxu0 %v3007_v12  ;;  %1510 = vmatprep.subr.bf16.mxu1 %v3013_v20 }
 0x56a   :  { %1470 = vmatpush1.bf16.msra.mxu0 %v3019_v22  ;;  %1511 = vmatpush1.bf16.msra.mxu1 %v3025_v24 }
 0x56b   :  { %1471 = vmatprep.subr.bf16.mxu0 %v3031_v25  ;;  %1512 = vmatprep.subr.bf16.mxu1 %v3037_v17 }
 0x56e   :  { %1472 = vmatpush1.bf16.msra.mxu0 %v3043_v26  ;;  %1513 = vmatpush1.bf16.msra.mxu1 %v3049_v27 }
 0x56f   :  { %1473 = vmatprep.subr.bf16.mxu0 %v3055_v0  ;;  %1514 = vmatprep.subr.bf16.mxu1 %v3061_v29 }
 0x572   :  { %1474 = vmatpush1.bf16.msra.mxu0 %v3067_v60  ;;  %1515 = vmatpush1.bf16.msra.mxu1 %v3073_v37 }
 0x573   :  { %1475 = vmatprep.subr.bf16.mxu0 %v3079_v38  ;;  %1516 = vmatprep.subr.bf16.mxu1 %v3085_v16 }
 0x576   :  { %1476 = vmatpush1.bf16.msra.mxu0 %v3091_v23  ;;  %1517 = vmatpush1.bf16.msra.mxu1 %v3097_v54 }
 0x577   :  { %1477 = vmatprep.subr.bf16.mxu0 %v3103_v30  ;;  %1518 = vmatprep.subr.bf16.mxu1 %v3109_v41 }
 0x57a   :  { %1478 = vmatpush1.bf16.msra.mxu0 %v3115_v42  ;;  %1519 = vmatpush1.bf16.msra.mxu1 %v3121_v43 }
 0x57b   :  { %1479 = vmatprep.subr.bf16.mxu0 %v3127_v44  ;;  %1520 = vmatprep.subr.bf16.mxu1 %v3133_v46 }
 0x57e   :  { %1480 = vmatpush1.bf16.msra.mxu0 %v3139_v47  ;;  %1521 = vmatpush1.bf16.msra.mxu1 %v3145_v48 }
 0x57f   :  { %1592 = vmatprep.subr.bf16.mxu0 %v2954_v39  ;;  %1633 = vmatprep.subr.bf16.mxu1 %v2960_v40 }
 0x634   :  { %v1372_v51 = vpop.f32.mrb[36].mxu0  ;;  %v1413_v52 = vpop.f32.mrb[36].mxu1 }
 0x635   :  { %v1420_v56 = vadd.f32 %v1372_v51, %v3298_v53  ;;  %v1422_v58 = vadd.f32 %v1413_v52, %v3299_v57  ;;  %v1374_v59 = vpop.f32.mrb[37].mxu0  ;;  %v1415_v39 = vpop.f32.mrb[37].mxu1 }
 0x636   :  { %v1421_v40 = vadd.f32 %v1374_v59, %v3300_v61  ;;  %v1423_v62 = vadd.f32 %v1415_v39, %v3301_v55  ;;  %v1376_v63 = vpop.f32.mrb[38].mxu0  ;;  %v1417_v1 = vpop.f32.mrb[38].mxu1 }
 0x637   :  { %v1936_v4 = vmul.f32 -1.442695, %v1420_v56  ;;  %v1377_v5 = vpop.f32.mrb[39].mxu0  ;;  %v1418_v6 = vpop.f32.mrb[39].mxu1  ;;  %v3306_v1 = vld [vmem:[#allocation27_spill] sm:$0xff] }
 0x638   :  { %v1937_v7 = vmul.f32 -1.442695, %v1421_v40  ;;  %v1938_v8 = vmul.f32 -1.442695, %v1423_v62  ;;  %v1454_v52 = vpop.permute.xlu1 %1453  ;;  %v3307_v5 = vld [vmem:[#allocation28_spill] sm:$0xff] }
 0x639   :  { %2168 = vpow2.f32 %v1936_v4  ;;  %vm1455_vm12 = vcmp.eq.s32.totalorder %v1454_v52, 1 }
 0x63a   :  { %2170 = vpow2.f32 %v1937_v7 }
 0x63b   :  { %2172 = vpow2.f32 %v1938_v8 }
 0x63c   :  { %2174 = vtanh.f32 %v1422_v58 }
 0x643   :  { %v2169_v9 = vpop.eup %2168 }
 0x644   :  { %v2171_v15 = vpop.eup %2170  ;;  %v1427_v36 = vadd.f32 1.0, %v2169_v9  ;;  %v3308_v9 = vld [vmem:[#allocation29_spill] sm:$0xff] }
 0x645   :  { %v1433_v13 = vadd.f32 1.0, %v2171_v15  ;;  %v2173_v45 = vpop.eup %2172 }
 0x646   :  { %2176 = vrcp.f32 %v1427_v36  ;;  %v2175_v18 = vpop.eup %2174  ;;  %v1440_v28 = vadd.f32 1.0, %v2173_v45  ;;  %v3309_v36 = vld [vmem:[#allocation30_spill] sm:$0xff] }
 0x647   :  { %2178 = vrcp.f32 %v1433_v13 }
 0x648   :  { %2180 = vrcp.f32 %v1440_v28 }
 0x650   :  { %v2177_v31 = vpop.eup %2176 }
 0x651   :  { %v2179_v34 = vpop.eup %2178  ;;  %v1444_v3 = vmul.f32 %v2177_v31, %v2175_v18 }
 0x652   :  { %v1443_v50 = vmul.f32 %v2179_v34, %v2970_v14  ;;  %v2181_v53 = vpop.eup %2180 }
 0x654   :  { %v3162_v51 = vadd.f32 %v1444_v3, %v1443_v50 }
 0x656   :  { %2182 = vtanh.f32 %v3162_v51 }
 0x660   :  { %v2183_v56 = vpop.eup %2182 }
 0x661   :  { %v1447_v57 = vmul.f32 %v2183_v56, %v2181_v53 }
 0x663   :  { %v3166_v58 = vsel %vm1455_vm12, %v1447_v57, %v2974_v35  ;;  %v1464_v59 = vpack.c.bf16 %v1447_v57, %v1447_v57  ;;  %v3302_v35 = vld [vmem:[#allocation23_spill] sm:$0xff] }
 0x665   :  { %1498 = vmatmul.mubr.bf16.vlgmr.msra.gmra.mrb[40].mxu0 %v1464_v59  ;;  %1539 = vmatmul.mubr.bf16.vlgmr.msra.gmra.mrb[40].mxu1 %v1464_v59 }
 0x666   :  { %1593 = vmatpush1.bf16.msra.mxu0 %v2912_v10  ;;  %1634 = vmatpush1.bf16.msra.mxu1 %v2918_v32  ;;  %v1705_v10 = vsel %vm1704_vm13, 1, %v3287_v19 }
 0x667   :  { %1594 = vmatprep.subr.bf16.mxu0 %v2981_v33  ;;  %1635 = vmatprep.subr.bf16.mxu1 %v2987_v2  ;;  %v3303_v2 = vld [vmem:[#allocation24_spill] sm:$0xff] }
 0x668   :  { %1624 = vmatprep.mubr.bf16.mxu0 %v3287_v19  ;;  %1665 = vmatprep.mubr.bf16.mxu1 %v3287_v19 }
 0x669   :  { %1707 = vperm.xlu1 %1987, %v1705_v10  }
 0x66a   :  { %1595 = vmatpush1.bf16.msra.mxu0 %v2995_v11  ;;  %1636 = vmatpush1.bf16.msra.mxu1 %v3001_v21 }
 0x66b   :  { %1596 = vmatprep.subr.bf16.mxu0 %v3007_v12  ;;  %1637 = vmatprep.subr.bf16.mxu1 %v3013_v20  ;;  %v3304_v20 = vld [vmem:[#allocation25_spill] sm:$0xff] }
 0x66e   :  { %1597 = vmatpush1.bf16.msra.mxu0 %v3019_v22  ;;  %1638 = vmatpush1.bf16.msra.mxu1 %v3025_v24  ;;  %v3305_v24 = vld [vmem:[#allocation26_spill] sm:$0xff] }
 0x66f   :  { %1598 = vmatprep.subr.bf16.mxu0 %v3031_v25  ;;  %1639 = vmatprep.subr.bf16.mxu1 %v3037_v17 }
 0x672   :  { %1599 = vmatpush1.bf16.msra.mxu0 %v3043_v26  ;;  %1640 = vmatpush1.bf16.msra.mxu1 %v3049_v27 }
 0x673   :  { %1600 = vmatprep.subr.bf16.mxu0 %v3055_v0  ;;  %1641 = vmatprep.subr.bf16.mxu1 %v3061_v29 }
 0x676   :  { %1601 = vmatpush1.bf16.msra.mxu0 %v3067_v60  ;;  %1642 = vmatpush1.bf16.msra.mxu1 %v3073_v37 }
 0x677   :  { %1602 = vmatprep.subr.bf16.mxu0 %v3079_v38  ;;  %1643 = vmatprep.subr.bf16.mxu1 %v3085_v16 }
 0x67a   :  { %1603 = vmatpush1.bf16.msra.mxu0 %v3091_v23  ;;  %1644 = vmatpush1.bf16.msra.mxu1 %v3097_v54 }
 0x67b   :  { %1604 = vmatprep.subr.bf16.mxu0 %v3103_v30  ;;  %1645 = vmatprep.subr.bf16.mxu1 %v3109_v41 }
 0x67e   :  { %1605 = vmatpush1.bf16.msra.mxu0 %v3115_v42  ;;  %1646 = vmatpush1.bf16.msra.mxu1 %v3121_v43 }
 0x67f   :  { %1606 = vmatprep.subr.bf16.mxu0 %v3127_v44  ;;  %1647 = vmatprep.subr.bf16.mxu1 %v3133_v46 }
 0x682   :  { %1607 = vmatpush1.bf16.msra.mxu0 %v3139_v47  ;;  %1648 = vmatpush1.bf16.msra.mxu1 %v3145_v48  ;;  %v1581_v48 = vpop.permute.xlu0 %1580 }
 0x683   :  { %vm1582_vm14 = vcmp.eq.s32.totalorder %v1581_v48, 1 }
 0x738   :  { %v1499_v32 = vpop.f32.mrb[40].mxu0  ;;  %v1540_v14 = vpop.f32.mrb[40].mxu1 }
 0x739   :  { %v1547_v33 = vadd.f32 %v1499_v32, %v3302_v35  ;;  %v1549_v11 = vadd.f32 %v1540_v14, %v3303_v2  ;;  %v1501_v21 = vpop.f32.mrb[41].mxu0  ;;  %v1542_v12 = vpop.f32.mrb[41].mxu1 }
 0x73a   :  { %v1548_v22 = vadd.f32 %v1501_v21, %v3304_v20  ;;  %v1550_v25 = vadd.f32 %v1542_v12, %v3305_v24  ;;  %v1503_v17 = vpop.f32.mrb[42].mxu0  ;;  %v1544_v26 = vpop.f32.mrb[42].mxu1 }
 0x73b   :  { %v1939_v27 = vmul.f32 -1.442695, %v1547_v33  ;;  %v1504_v0 = vpop.f32.mrb[43].mxu0  ;;  %v1545_v29 = vpop.f32.mrb[43].mxu1 }
 0x73c   :  { %v1940_v60 = vmul.f32 -1.442695, %v1548_v22  ;;  %v1941_v19 = vmul.f32 -1.442695, %v1550_v25 }
 0x73d   :  { %2184 = vpow2.f32 %v1939_v27 }
 0x73e   :  { %2186 = vpow2.f32 %v1940_v60 }
 0x73f   :  { %2188 = vpow2.f32 %v1941_v19 }
 0x740   :  { %2190 = vtanh.f32 %v1549_v11  ;;  %v1708_v11 = vpop.permute.xlu1 %1707 }
 0x741   :  { %vm1709_vm15 = vcmp.eq.s32.totalorder %v1708_v11, 1 }
 0x747   :  { %v2185_v37 = vpop.eup %2184 }
 0x748   :  { %v2187_v38 = vpop.eup %2186  ;;  %v1554_v16 = vadd.f32 1.0, %v2185_v37 }
 0x749   :  { %v1560_v23 = vadd.f32 1.0, %v2187_v38  ;;  %v2189_v54 = vpop.eup %2188 }
 0x74a   :  { %2192 = vrcp.f32 %v1554_v16  ;;  %v2191_v30 = vpop.eup %2190  ;;  %v1567_v44 = vadd.f32 1.0, %v2189_v54 }
 0x74b   :  { %2194 = vrcp.f32 %v1560_v23 }
 0x74c   :  { %2196 = vrcp.f32 %v1567_v44 }
 0x754   :  { %v2193_v41 = vpop.eup %2192 }
 0x755   :  { %v2195_v42 = vpop.eup %2194  ;;  %v1571_v43 = vmul.f32 %v2193_v41, %v2191_v30 }
 0x756   :  { %v1570_v46 = vmul.f32 %v2195_v42, %v3162_v51  ;;  %v2197_v49 = vpop.eup %2196 }
 0x758   :  { %v1572_v47 = vadd.f32 %v1571_v43, %v1570_v46 }
 0x75a   :  { %2198 = vtanh.f32 %v1572_v47 }
 0x764   :  { %v2199_v39 = vpop.eup %2198 }
 0x765   :  { %v1574_v61 = vmul.f32 %v2199_v39, %v2197_v49 }
 0x767   :  { %v1583_v40 = vsel %vm1582_vm14, %v1574_v61, %v3166_v58  ;;  %v1591_v55 = vpack.c.bf16 %v1574_v61, %v1574_v61 }
 0x769   :  { %1625 = vmatmul.mubr.bf16.vlgmr.msra.gmra.mrb[44].mxu0 %v1591_v55  ;;  %1666 = vmatmul.mubr.bf16.vlgmr.msra.gmra.mrb[44].mxu1 %v1591_v55 }
 0x83c   :  { %v1626_v62 = vpop.f32.mrb[44].mxu0  ;;  %v1667_v63 = vpop.f32.mrb[44].mxu1 }
 0x83d   :  { %v1674_v4 = vadd.f32 %v1626_v62, %v3306_v1  ;;  %v1676_v6 = vadd.f32 %v1667_v63, %v3307_v5  ;;  %v1628_v7 = vpop.f32.mrb[45].mxu0  ;;  %v1669_v8 = vpop.f32.mrb[45].mxu1 }
 0x83e   :  { %v1675_v15 = vadd.f32 %v1628_v7, %v3308_v9  ;;  %v1677_v13 = vadd.f32 %v1669_v8, %v3309_v36  ;;  %v1630_v45 = vpop.f32.mrb[46].mxu0  ;;  %v1671_v18 = vpop.f32.mrb[46].mxu1 }
 0x83f   :  { %v1942_v31 = vmul.f32 -1.442695, %v1674_v4  ;;  %v1631_v34 = vpop.f32.mrb[47].mxu0  ;;  %v1672_v3 = vpop.f32.mrb[47].mxu1 }
 0x840   :  { %v1943_v28 = vmul.f32 -1.442695, %v1675_v15  ;;  %v1944_v50 = vmul.f32 -1.442695, %v1677_v13 }
 0x841   :  { %2200 = vpow2.f32 %v1942_v31 }
 0x842   :  { %2202 = vpow2.f32 %v1943_v28 }
 0x843   :  { %2204 = vpow2.f32 %v1944_v50 }
 0x844   :  { %2206 = vtanh.f32 %v1676_v6 }
 0x84b   :  { %v2201_v51 = vpop.eup %2200 }
 0x84c   :  { %v2203_v52 = vpop.eup %2202  ;;  %v1681_v53 = vadd.f32 1.0, %v2201_v51 }
 0x84d   :  { %v1687_v56 = vadd.f32 1.0, %v2203_v52  ;;  %v2205_v57 = vpop.eup %2204 }
 0x84e   :  { %2208 = vrcp.f32 %v1681_v53  ;;  %v2207_v58 = vpop.eup %2206  ;;  %v1694_v14 = vadd.f32 1.0, %v2205_v57 }
 0x84f   :  { %2210 = vrcp.f32 %v1687_v56 }
 0x850   :  { %2212 = vrcp.f32 %v1694_v14 }
 0x858   :  { %v2209_v59 = vpop.eup %2208 }
 0x859   :  { %v2211_v10 = vpop.eup %2210  ;;  %v1698_v32 = vmul.f32 %v2209_v59, %v2207_v58 }
 0x85a   :  { %v1697_v35 = vmul.f32 %v2211_v10, %v1572_v47  ;;  %v2213_v2 = vpop.eup %2212 }
 0x85c   :  { %v1699_v33 = vadd.f32 %v1698_v32, %v1697_v35 }
 0x85e   :  { %1712 = vst [vmem:[#allocation3] sm:$0xff] %v1699_v33  ;;  %2214 = vtanh.f32 %v1699_v33 }
 0x868   :  { %v2215_v21 = vpop.eup %2214 }
 0x869   :  { %v1701_v12 = vmul.f32 %v2215_v21, %v2213_v2 }
 0x86b   :  { %v1710_v20 = vsel %vm1709_vm15, %v1701_v12, %v1583_v40  ;;  %1711 = vst [vmem:[#allocation2] sm:$0xff] %v1701_v12 }
 0x86c   :  { %1713 = vst [vmem:[#allocation4] sm:$0xff] %v1710_v20 }
 0x86d PF:  { %v3310_v22 = vmov 0.0   ;;  %v2249_v24 = vld [vmem:[%s3257_s7] sm:$0xff]   ;;  %vm2259_vm0 = vmmov 0   ;;  %v2250_v25 = vld [vmem:[%s3257_s7 + $0x8] sm:$0xff]   ;;  %v2251_v17 = vld [vmem:[%s3257_s7 + $0x10] sm:$0xff]  }
 0x86e   :  { %1963 = vmatprep.subr.bf16.mxu0 %v3310_v22  ;;  %1979 = vmatprep.mubr.msk.bf16.mxu0 %vm2259_vm0, %v3310_v22  ;;  %v2252_v26 = vld [vmem:[%s3257_s7 + $0x18] sm:$0xff]   ;;  %v2253_v27 = vld [vmem:[%s3257_s7 + $0x20] sm:$0xff]   ;;  %v2254_v0 = vld [vmem:[%s3257_s7 + $0x28] sm:$0xff]  }
 0x86f   :  { %1964 = vmatpush3.bf16.msra.mxu0 %v2249_v24  ;;  %v2255_v29 = vld [vmem:[%s3257_s7 + $0x30] sm:$0xff]   ;;  %v2256_v60 = vld [vmem:[%s3257_s7 + $0x38] sm:$0xff]   ;;  %v1945_v38 = vld [vmem:[%s3258_s8] ss:$0 sm:$0xff] }
 0x870   :  { %1965 = vmatprep.subr.bf16.mxu0 %v3310_v22 }
 0x873   :  { %1966 = vmatpush3.bf16.msra.mxu0 %v2250_v25  ;;  %v1717_v19 = vld [vmem:[#allocation4] sm:$0xff] }
 0x874   :  { %1967 = vmatprep.subr.bf16.mxu0 %v3310_v22  ;;  %v1718_v37 = vpack.c.bf16 %v1717_v19, %v1717_v19 }
 0x877   :  { %1968 = vmatpush3.bf16.msra.mxu0 %v2251_v17 }
 0x878   :  { %1969 = vmatprep.subr.bf16.mxu0 %v3310_v22 }
 0x87b   :  { %1970 = vmatpush3.bf16.msra.mxu0 %v2252_v26 }
 0x87c   :  { %1971 = vmatprep.subr.bf16.mxu0 %v3310_v22 }
 0x87f   :  { %1972 = vmatpush3.bf16.msra.mxu0 %v2253_v27 }
 0x880   :  { %1973 = vmatprep.subr.bf16.mxu0 %v3310_v22 }
 0x883   :  { %1974 = vmatpush3.bf16.msra.mxu0 %v2254_v0 }
 0x884   :  { %1975 = vmatprep.subr.bf16.mxu0 %v3310_v22 }
 0x887   :  { %1976 = vmatpush3.bf16.msra.mxu0 %v2255_v29 }
 0x888   :  { %1977 = vmatprep.subr.bf16.mxu0 %v3310_v22 }
 0x88b   :  { %1978 = vmatpush3.bf16.msra.mxu0 %v2256_v60 }
 0x88e   :  { %1980 = vmatmul.mubr.bf16.vlgmr.msra.gmra.mrb[0].mxu0 %v1718_v37 }
 0x961   :  { %v1824_v16 = vpop.f32.mrb[0].mxu0 }
 0x962   :  { %v1825_v23 = vadd.f32 %v1945_v38, %v1824_v16  ;;  %v1981_v54 = vpop.f32.mrb[1].mxu0 }
 0x963   :  { %v1827_v30 = vpop.f32.mrb[2].mxu0 }
 0x964   :  { %1830 = vst [vmem:[%s3259_s9] sm:$0xff] %v1825_v23  ;;  %v1982_v41 = vpop.f32.mrb[3].mxu0 }

</bundles_post_ra>
